<compile_context>
chip_gen: v7x
topology: tpu7x:2x2x1
jax: 0.10.0
libtpu: 0.0.40
codegen_flags: <defaults>
</compile_context>

<pallas_src>
import functools
import math

import jax
import jax.numpy as jnp
from jax.experimental import pallas as pl
from jax.experimental.pallas import tpu as pltpu


def _round_up(x, m):
    return (x + m - 1) // m * m


def _pick_tile(dim, prefs):
    for t in prefs:
        if dim >= t and dim % t == 0:
            return t
    return dim


# ----------------------------------------------------------------------------
# Kernel 1: tiled MXU matmul with fused bias (+ReLU) epilogue.
#   bf16 operands, f32 VMEM accumulator.  Used for 1x1 convs, transposed convs,
#   linear layers and the im2col fallback of small-spatial 3x3 convs.
# ----------------------------------------------------------------------------
def _mm_kernel(a_ref, b_ref, bias_ref, o_ref, acc_ref, *, relu, nk):
    k = pl.program_id(2)

    @pl.when(k == 0)
    def _():
        acc_ref[...] = jnp.zeros_like(acc_ref)

    acc_ref[...] += jnp.dot(a_ref[...], b_ref[...],
                            preferred_element_type=jnp.float32)

    @pl.when(k == nk - 1)
    def _():
        out = acc_ref[...] + bias_ref[...]
        if relu:
            out = jnp.maximum(out, 0.0)
        o_ref[...] = out.astype(o_ref.dtype)


def matmul_bias(a, b, bias=None, relu=False, out_dtype=jnp.bfloat16):
    """relu_maybe(a @ b + bias) on the MXU. a:(M,K), b:(K,N); bias:(1,N) f32 or None."""
    M, K = a.shape
    Kb, N = b.shape
    assert K == Kb
    a = a.astype(jnp.bfloat16)
    b = b.astype(jnp.bfloat16)
    if bias is None:
        bias = jnp.zeros((1, N), jnp.float32)
    bias = bias.astype(jnp.float32).reshape(1, N)

    # Only tiny-K operands (first FC layer, 24-channel residual 1x1) need K padding;
    # every other K in this net is already a multiple of 128 (weights pre-arranged at init).
    if K < 128:
        a = jnp.pad(a, ((0, 0), (0, 128 - K)))
        b = jnp.pad(b, ((0, 128 - K), (0, 0)))
        K = 128
    Mp = _round_up(M, 8)                      # activation M padded at most to a multiple of 8
    if Mp != M:
        a = jnp.pad(a, ((0, Mp - M), (0, 0)))

    tm = _pick_tile(Mp, (256, 128, 64, 32, 16, 8))
    tn = _pick_tile(N, (256, 128))
    tk = _pick_tile(K, (512, 256, 128))
    nk = K // tk

    out = pl.pallas_call(
        functools.partial(_mm_kernel, relu=relu, nk=nk),
        out_shape=jax.ShapeDtypeStruct((Mp, N), out_dtype),
        grid_spec=pltpu.PrefetchScalarGridSpec(
            num_scalar_prefetch=0,
            grid=(Mp // tm, N // tn, nk),
            in_specs=[
                pl.BlockSpec((tm, tk), lambda i, j, k: (i, k)),
                pl.BlockSpec((tk, tn), lambda i, j, k: (k, j)),
                pl.BlockSpec((1, tn), lambda i, j, k: (0, j)),
            ],
            out_specs=pl.BlockSpec((tm, tn), lambda i, j, k: (i, j)),
            scratch_shapes=[pltpu.VMEM((tm, tn), jnp.float32)],
        ),
        compiler_params=pltpu.CompilerParams(
            dimension_semantics=("parallel", "parallel", "arbitrary"),
            vmem_limit_bytes=32 * 1024 * 1024),
    )(a, b, bias)
    return out[:M] if Mp != M else out


# ----------------------------------------------------------------------------
# Kernel 2: fused 3x3 conv (padding=1, no bias -- BN absorbs it).
#   - accumulates the 9 taps as 9 MXU matmuls inside ONE kernel invocation
#     (no 9x im2col in HBM; only a 3x W-shift stack is prepared in JAX and the
#     3 H taps are sliced from the resident VMEM block),
#   - emits per-channel [sum, sum_sq] from the f32 accumulator so BatchNorm
#     needs no extra full passes over the activation.
# Used for layers whose width is a multiple of 8 (the large ones); tiny layers
# take the im2col fallback below.
# ----------------------------------------------------------------------------
def _conv3x3_kernel(xs_ref, w_ref, y_ref, st_ref, acc_ref, *, N, H, W):
    cin = xs_ref.shape[3]
    m = N * H * W
    acc_ref[...] = jnp.zeros_like(acc_ref)
    for dh in range(3):
        for dw in range(3):
            xt = xs_ref[dw * N:(dw + 1) * N, dh:dh + H, :, :].reshape(m, cin)
            acc_ref[...] += jnp.dot(xt, w_ref[dh * 3 + dw],
                                    preferred_element_type=jnp.float32)
    acc = acc_ref[...]
    y_ref[...] = acc.reshape(N, H, W, acc.shape[1]).astype(y_ref.dtype)
    st_ref[...] = jnp.concatenate(
        [jnp.sum(acc, axis=0, keepdims=True),
         jnp.sum(acc * acc, axis=0, keepdims=True)], axis=0)


def _conv3x3_fused(x, w9):
    N, H, W, C = x.shape
    Cout = w9.shape[2]
    tco = 256 if (Cout > 256 and Cout % 256 == 0) else Cout
    xp = jnp.pad(x, ((0, 0), (1, 1), (1, 1), (0, 0)))
    # 3 W-shifted views stacked on the batch axis (3x prep vs 9x for full im2col).
    xs = jnp.concatenate([xp[:, :, dw:dw + W, :] for dw in range(3)], axis=0)
    y, st = pl.pallas_call(
        functools.partial(_conv3x3_kernel, N=N, H=H, W=W),
        out_shape=(jax.ShapeDtypeStruct((N, H, W, Cout), jnp.bfloat16),
                   jax.ShapeDtypeStruct((2, Cout), jnp.float32)),
        grid_spec=pltpu.PrefetchScalarGridSpec(
            num_scalar_prefetch=0,
            grid=(Cout // tco,),
            in_specs=[
                pl.BlockSpec((3 * N, H + 2, W, C), lambda j: (0, 0, 0, 0)),
                pl.BlockSpec((9, C, tco), lambda j: (0, 0, j)),
            ],
            out_specs=(pl.BlockSpec((N, H, W, tco), lambda j: (0, 0, 0, j)),
                       pl.BlockSpec((2, tco), lambda j: (0, j))),
            scratch_shapes=[pltpu.VMEM((N * H * W, tco), jnp.float32)],
        ),
        compiler_params=pltpu.CompilerParams(
            dimension_semantics=("parallel",),
            vmem_limit_bytes=32 * 1024 * 1024),
    )(xs, w9)
    return y, st


def _conv3x3_im2col(x, w9):
    """Fallback for tiny spatial sizes: im2col + the generic MXU matmul kernel."""
    N, H, W, C = x.shape
    Cout = w9.shape[2]
    xp = jnp.pad(x, ((0, 0), (1, 1), (1, 1), (0, 0)))
    cols = jnp.concatenate(
        [xp[:, dh:dh + H, dw:dw + W, :] for dh in range(3) for dw in range(3)],
        axis=-1)
    y = matmul_bias(cols.reshape(N * H * W, 9 * C), w9.reshape(9 * C, Cout))
    y = y.reshape(N, H, W, Cout)
    yf = y.astype(jnp.float32)
    st = jnp.stack([jnp.sum(yf, axis=(0, 1, 2)),
                    jnp.sum(yf * yf, axis=(0, 1, 2))])
    return y, st


_FUSED_CONV_OK = [True]


def conv3x3(x, w9):
    """3x3 conv, padding=1, no bias (absorbed by the following BatchNorm).
    Returns (y bf16 NHWC, per-channel [sum, sum_sq] f32 of the pre-BN output)."""
    if x.shape[2] % 8 == 0 and _FUSED_CONV_OK[0]:
        try:
            return _conv3x3_fused(x, w9)
        except Exception:
            _FUSED_CONV_OK[0] = False  # Mosaic rejected the fused lowering; use fallback.
    return _conv3x3_im2col(x, w9)


# ----------------------------------------------------------------------------
# Kernel 3: fused BatchNorm-apply epilogue
#   out = relu(x * scale + shift) [+ per-sample time-embedding bias] [+ residual]
# One pass over the activation instead of separate BN / ReLU / add passes.
# ----------------------------------------------------------------------------
def _bn_act_kernel(*args, relu, has_vec, has_res):
    i = 0
    x_ref = args[i]; i += 1
    sc_ref = args[i]; i += 1
    sh_ref = args[i]; i += 1
    vec_ref = None
    res_ref = None
    if has_vec:
        vec_ref = args[i]; i += 1
    if has_res:
        res_ref = args[i]; i += 1
    o_ref = args[i]

    y = x_ref[...].astype(jnp.float32) * sc_ref[...] + sh_ref[...]
    if relu:
        y = jnp.maximum(y, 0.0)
    if has_vec:
        y = y + vec_ref[...].astype(jnp.float32)
    if has_res:
        y = y + res_ref[...].astype(jnp.float32)
    o_ref[...] = y.astype(o_ref.dtype)


def bn_act(x, scale, shift, per_sample=None, residual=None, relu=True):
    N, H, W, C = x.shape
    HW = H * W
    inputs = [x.reshape(N, HW, C),
              scale.reshape(1, 1, C).astype(jnp.float32),
              shift.reshape(1, 1, C).astype(jnp.float32)]
    in_specs = [pl.BlockSpec((1, HW, C), lambda n: (n, 0, 0)),
                pl.BlockSpec((1, 1, C), lambda n: (0, 0, 0)),
                pl.BlockSpec((1, 1, C), lambda n: (0, 0, 0))]
    has_vec = per_sample is not None
    has_res = residual is not None
    if has_vec:
        inputs.append(per_sample.reshape(N, 1, C))
        in_specs.append(pl.BlockSpec((1, 1, C), lambda n: (n, 0, 0)))
    if has_res:
        inputs.append(residual.reshape(N, HW, C))
        in_specs.append(pl.BlockSpec((1, HW, C), lambda n: (n, 0, 0)))

    out = pl.pallas_call(
        functools.partial(_bn_act_kernel, relu=relu,
                          has_vec=has_vec, has_res=has_res),
        out_shape=jax.ShapeDtypeStruct((N, HW, C), jnp.bfloat16),
        grid_spec=pltpu.PrefetchScalarGridSpec(
            num_scalar_prefetch=0,
            grid=(N,),
            in_specs=in_specs,
            out_specs=pl.BlockSpec((1, HW, C), lambda n: (n, 0, 0)),
        ),
        compiler_params=pltpu.CompilerParams(dimension_semantics=("parallel",)),
    )(*inputs)
    return out.reshape(N, H, W, C)


def bn_scale_shift(stats, gamma, beta, count, eps=1e-5):
    """Fold training-mode batch statistics into a per-channel scale / shift."""
    mean = stats[0] / count
    var = jnp.maximum(stats[1] / count - mean * mean, 0.0)
    scale = gamma / jnp.sqrt(var + eps)
    shift = beta - mean * scale
    return scale, shift


# ----------------------------------------------------------------------------
# Layer helpers (thin JAX glue around the Pallas kernels)
# ----------------------------------------------------------------------------
def conv1x1(x, w, bias, out_dtype=jnp.bfloat16):
    N, H, W, C = x.shape
    y = matmul_bias(x.reshape(N * H * W, C), w, bias, out_dtype=out_dtype)
    return y.reshape(N, H, W, w.shape[1])


def conv_transpose2x2(x, w, bias4):
    """ConvTranspose2d(k=2, s=2). w pre-arranged (Cin, 4*Cout) [(kh,kw,co) columns],
    bias pre-tiled to (1, 4*Cout) at init."""
    N, H, W, C = x.shape
    cout = w.shape[1] // 4
    y = matmul_bias(x.reshape(N * H * W, C), w, bias4)
    y = y.reshape(N, H, W, 2, 2, cout).transpose(0, 1, 3, 2, 4, 5)
    # TODO(synk): the (kh, kw) pixel interleave is left to XLA; a dedicated out BlockSpec
    # could write it directly and save one HBM round-trip of the upsampled tensor.
    return y.reshape(N, 2 * H, 2 * W, cout)


def maxpool2x2(x):
    N, H, W, C = x.shape
    return x.reshape(N, H // 2, 2, W // 2, 2, C).max(axis=(2, 4))


def positional_encoding(omega, B, H, W):
    row = jnp.arange(H, dtype=jnp.float32) / H
    er1 = jnp.sin(omega[None, :] * row[:, None])
    er2 = jnp.cos(omega[None, :] * row[:, None])
    rows = jnp.concatenate([jnp.repeat(er1[:, None, :], W, axis=1),
                            jnp.repeat(er2[:, None, :], W, axis=1)], axis=-1)
    col = jnp.arange(W, dtype=jnp.float32) / W
    ec1 = jnp.sin(omega[None, :] * col[:, None])
    ec2 = jnp.cos(omega[None, :] * col[:, None])
    cols = jnp.concatenate([jnp.repeat(ec1[None, :, :], H, axis=0),
                            jnp.repeat(ec2[None, :, :], H, axis=0)], axis=-1)
    enc = jnp.concatenate([rows, cols], axis=-1)  # (H, W, 4*posenc)
    return jnp.broadcast_to(enc[None], (B, H, W, enc.shape[-1]))


# ----------------------------------------------------------------------------
# UNet blocks
# ----------------------------------------------------------------------------
def double_conv_res(p, x, t_embed):
    N, H, W, _ = x.shape
    count = N * H * W

    h, st = conv3x3(x, p["w1"])
    sc, sh = bn_scale_shift(st, p["g1"], p["be1"], count)
    tvec = None
    if ("wt" in p) and (t_embed is not None):
        tvec = matmul_bias(t_embed, p["wt"], p["bt"])          # (N, C1) bf16
    h = bn_act(h, sc, sh, per_sample=tvec, relu=True)          # BN + ReLU + t-bias, one pass

    h, st = conv3x3(h, p["w2"])
    sc, sh = bn_scale_shift(st, p["g2"], p["be2"], count)
    res = conv1x1(x, p["wr"], p["br"]) if "wr" in p else x
    return bn_act(h, sc, sh, residual=res, relu=True)          # BN + ReLU + residual, one pass


def down_block(p, x, t_embed):
    return double_conv_res(p, maxpool2x2(x), t_embed)


def up_block(p, x1, x2, t_embed):
    x1u = conv_transpose2x2(x1, p["wu"], p["bu"])
    # Power-of-two spatial sizes: the F.pad alignment step in the reference is a no-op here.
    x = jnp.concatenate([x2, x1u], axis=-1)
    return double_conv_res(p["dc"], x, t_embed)


def fc_forward(p, t):
    h = matmul_bias(t, p["w1"], p["b1"], relu=True)
    return matmul_bias(h, p["w2"], p["b2"])


def unet_forward(params, x_nchw, t):
    x_nchw = x_nchw.astype(jnp.float32)
    x_in = jnp.transpose(x_nchw, (0, 2, 3, 1))                 # NCHW -> NHWC
    N, H, W, _ = x_in.shape

    t_embed = fc_forward(params["fc"], t)                      # (N, 64) bf16
    enc = positional_encoding(params["omega"], N, H, W)        # (N, H, W, 20)
    t_ch = jnp.broadcast_to(t[:, None, None, :], (N, H, W, 1))
    x = jnp.concatenate([x_in, enc, t_ch], axis=-1).astype(jnp.bfloat16)   # (N,H,W,24)

    x1 = double_conv_res(params["inc"], x, None)
    x2 = down_block(params["down1"], x1, None)
    x3 = down_block(params["down2"], x2, None)
    x4 = down_block(params["down3"], x3, None)
    x5 = down_block(params["down4"], x4, None)
    y = up_block(params["up1"], x5, x4, t_embed)
    y = up_block(params["up2"], y, x3, t_embed)
    y = up_block(params["up3"], y, x2, t_embed)
    y = up_block(params["up4"], y, x1, t_embed)
    out = conv1x1(y, params["outc"]["w"], params["outc"]["b"], out_dtype=jnp.float32)
    out = jnp.transpose(out, (0, 3, 1, 2))                     # NHWC -> NCHW
    return out + x_nchw


# ----------------------------------------------------------------------------
# Deterministic parameter initialization (weights pre-arranged for the kernels)
# ----------------------------------------------------------------------------
def init_params(key, n_channels=3, n_classes=3, embed_size=64, posenc=5):
    keys = iter(jax.random.split(key, 128))

    def nk():
        return next(keys)

    def conv3_w(cin, cout):
        # pre-arranged (tap = kh*3+kw, cin, cout), bf16 -> no per-forward transposes.
        w = jax.random.normal(nk(), (9, cin, cout), jnp.float32) / math.sqrt(9 * cin)
        return w.astype(jnp.bfloat16)

    def lin_w(cin, cout):
        w = jax.random.normal(nk(), (cin, cout), jnp.float32) / math.sqrt(cin)
        return w.astype(jnp.bfloat16)

    def bias(n):
        return jnp.zeros((1, n), jnp.float32)

    def dc(cin, cout, t_embed=None):
        p = dict(
            w1=conv3_w(cin, cout),
            g1=jnp.ones(cout, jnp.float32), be1=jnp.zeros(cout, jnp.float32),
            w2=conv3_w(cout, cout),
            g2=jnp.ones(cout, jnp.float32), be2=jnp.zeros(cout, jnp.float32),
        )
        if cin != cout:
            p["wr"] = lin_w(cin, cout)
            p["br"] = bias(cout)
        if t_embed is not None:
            p["wt"] = lin_w(t_embed, cout)
            p["bt"] = bias(cout)
        return p

    def up(cin, cout, t_embed):
        co = cin // 2
        w = jax.random.normal(nk(), (cin, 2, 2, co), jnp.float32) / math.sqrt(4 * cin)
        return dict(
            wu=w.reshape(cin, 4 * co).astype(jnp.bfloat16),    # columns ordered (kh, kw, cout)
            bu=jnp.zeros((1, 4 * co), jnp.float32),            # bias pre-tiled over (kh, kw)
            dc=dc(cin, cout, t_embed),
        )

    in_ch = n_channels + 4 * posenc + 1   # 3 + 20 + 1 = 24
    return {
        "omega": jnp.exp(math.log(20.0) * jnp.linspace(0.0, 1.0, posenc)),
        "inc": dc(in_ch, 64),
        "down1": dc(64, 128),
        "down2": dc(128, 256),
        "down3": dc(256, 512),
        "down4": dc(512, 1024),
        "up1": up(1024, 512, embed_size),
        "up2": up(512, 256, embed_size),
        "up3": up(256, 128, embed_size),
        "up4": up(128, 64, embed_size),
        "outc": dict(w=lin_w(64, n_classes), b=bias(n_classes)),
        "fc": dict(w1=lin_w(1, embed_size), b1=bias(embed_size),
                   w2=lin_w(embed_size, embed_size), b2=bias(embed_size)),
    }


# ----------------------------------------------------------------------------
if __name__ == "__main__":
    key = jax.random.PRNGKey(0)
    kx, kt, kp, kc1, kc2 = jax.random.split(key, 5)

    # Self-check of the fused 3x3-conv kernel against the im2col reference path.
    # If the fused lowering is unavailable (or mismatches), fall back transparently.
    try:
        xc = jax.random.normal(kc1, (1, 8, 8, 16), jnp.float32).astype(jnp.bfloat16)
        wc = (0.1 * jax.random.normal(kc2, (9, 16, 64), jnp.float32)).astype(jnp.bfloat16)
        yf, sf = _conv3x3_fused(xc, wc)
        yr, sr = _conv3x3_im2col(xc, wc)
        ok = (jnp.allclose(yf.astype(jnp.float32), yr.astype(jnp.float32),
                           rtol=5e-2, atol=5e-2)
              and jnp.allclose(sf, sr, rtol=5e-2, atol=5e-1))
        if not bool(ok):
            _FUSED_CONV_OK[0] = False
    except Exception:
        _FUSED_CONV_OK[0] = False

    N, C, H, W = 2, 3, 16, 16
    x = jax.random.normal(kx, (N, C, H, W), jnp.float32)
    t = jax.random.uniform(kt, (N, 1), jnp.float32)

    params = init_params(kp)
    out = unet_forward(params, x, t)
    out = jax.block_until_ready(out)

    assert out.shape == (N, C, H, W), out.shape
    assert bool(jnp.all(jnp.isfinite(out)))
    print("KERNEL_OK")
</pallas_src>

<mosaic_0001>
module attributes {stable_mosaic.version = 11 : i64} {
  func.func @_conv3x3_kernel(%arg0: i32, %arg1: memref<3x10x8x16xbf16, #tpu.memory_space<vmem>>, %arg2: memref<9x16x64xbf16, #tpu.memory_space<vmem>>, %arg3: memref<1x8x8x64xbf16, #tpu.memory_space<vmem>>, %arg4: memref<2x64xf32, #tpu.memory_space<vmem>>, %arg5: memref<64x64xf32, #tpu.memory_space<vmem>>) attributes {dimension_semantics = [#tpu.dimension_semantics<parallel>], iteration_bounds = array<i64: 1>, scalar_prefetch = 0 : i64, scratch_operands = 1 : i64, tpu.core_type = #tpu.core_type<tc>, window_params = [{pipeline_mode = #tpu.pipeline_mode<synchronous>, transform_indices = @transform_0, window_bounds = array<i64: 3, 10, 8, 16>}, {transform_indices = @transform_1, window_bounds = array<i64: 9, 16, 64>}, {transform_indices = @transform_2, window_bounds = array<i64: 1, 8, 8, 64>}, {transform_indices = @transform_3, window_bounds = array<i64: 2, 64>}]} {
    %cst = arith.constant 0.000000e+00 : f32
    %0 = vector.broadcast %cst : f32 to vector<64x64xf32>
    %c0 = arith.constant 0 : index
    %c0_0 = arith.constant 0 : index
    %1 = vector.load %arg5[%c0, %c0_0] : memref<64x64xf32, #tpu.memory_space<vmem>>, vector<64x64xf32>
    tpu.vector_store %arg5[%c0, %c0_0], %0 {strides = array<i32>} : memref<64x64xf32, #tpu.memory_space<vmem>>, vector<64x64xf32>,
    %c0_1 = arith.constant 0 : index
    %c0_2 = arith.constant 0 : index
    %c0_3 = arith.constant 0 : index
    %c0_4 = arith.constant 0 : index
    %2 = vector.load %arg1[%c0_1, %c0_2, %c0_3, %c0_4] : memref<3x10x8x16xbf16, #tpu.memory_space<vmem>>, vector<1x8x8x16xbf16>
    %3 = vector.shape_cast %2 : vector<1x8x8x16xbf16> to vector<64x16xbf16>
    %c0_5 = arith.constant 0 : index
    %c0_6 = arith.constant 0 : index
    %4 = vector.load %arg5[%c0_5, %c0_6] : memref<64x64xf32, #tpu.memory_space<vmem>>, vector<64x64xf32>
    %c0_7 = arith.constant 0 : index
    %c0_8 = arith.constant 0 : index
    %c0_9 = arith.constant 0 : index
    %5 = vector.load %arg2[%c0_7, %c0_8, %c0_9] : memref<9x16x64xbf16, #tpu.memory_space<vmem>>, vector<1x16x64xbf16>
    %6 = vector.shape_cast %5 : vector<1x16x64xbf16> to vector<16x64xbf16>
    %cst_10 = arith.constant dense<0.000000e+00> : vector<64x64xf32>
    %7 = tpu.matmul %3, %6, %cst_10 {dimension_numbers = #tpu.dot_dimension_numbers<[1], [0], [0], [1], [0, 0, 1, 1], [], []>} : vector<64x16xbf16>, vector<16x64xbf16>, vector<64x64xf32> -> vector<64x64xf32>
    %8 = arith.addf %4, %7 : vector<64x64xf32>
    %c0_11 = arith.constant 0 : index
    %c0_12 = arith.constant 0 : index
    %9 = vector.load %arg5[%c0_11, %c0_12] : memref<64x64xf32, #tpu.memory_space<vmem>>, vector<64x64xf32>
    tpu.vector_store %arg5[%c0_11, %c0_12], %8 {strides = array<i32>} : memref<64x64xf32, #tpu.memory_space<vmem>>, vector<64x64xf32>,
    %c1 = arith.constant 1 : index
    %c0_13 = arith.constant 0 : index
    %c0_14 = arith.constant 0 : index
    %c0_15 = arith.constant 0 : index
    %10 = vector.load %arg1[%c1, %c0_13, %c0_14, %c0_15] : memref<3x10x8x16xbf16, #tpu.memory_space<vmem>>, vector<1x8x8x16xbf16>
    %11 = vector.shape_cast %10 : vector<1x8x8x16xbf16> to vector<64x16xbf16>
    %c0_16 = arith.constant 0 : index
    %c0_17 = arith.constant 0 : index
    %12 = vector.load %arg5[%c0_16, %c0_17] : memref<64x64xf32, #tpu.memory_space<vmem>>, vector<64x64xf32>
    %c1_18 = arith.constant 1 : index
    %c0_19 = arith.constant 0 : index
    %c0_20 = arith.constant 0 : index
    %13 = vector.load %arg2[%c1_18, %c0_19, %c0_20] : memref<9x16x64xbf16, #tpu.memory_space<vmem>>, vector<1x16x64xbf16>
    %14 = vector.shape_cast %13 : vector<1x16x64xbf16> to vector<16x64xbf16>
    %cst_21 = arith.constant dense<0.000000e+00> : vector<64x64xf32>
    %15 = tpu.matmul %11, %14, %cst_21 {dimension_numbers = #tpu.dot_dimension_numbers<[1], [0], [0], [1], [0, 0, 1, 1], [], []>} : vector<64x16xbf16>, vector<16x64xbf16>, vector<64x64xf32> -> vector<64x64xf32>
    %16 = arith.addf %12, %15 : vector<64x64xf32>
    %c0_22 = arith.constant 0 : index
    %c0_23 = arith.constant 0 : index
    %17 = vector.load %arg5[%c0_22, %c0_23] : memref<64x64xf32, #tpu.memory_space<vmem>>, vector<64x64xf32>
    tpu.vector_store %arg5[%c0_22, %c0_23], %16 {strides = array<i32>} : memref<64x64xf32, #tpu.memory_space<vmem>>, vector<64x64xf32>,
    %c2 = arith.constant 2 : index
    %c0_24 = arith.constant 0 : index
    %c0_25 = arith.constant 0 : index
    %c0_26 = arith.constant 0 : index
    %18 = vector.load %arg1[%c2, %c0_24, %c0_25, %c0_26] : memref<3x10x8x16xbf16, #tpu.memory_space<vmem>>, vector<1x8x8x16xbf16>
    %19 = vector.shape_cast %18 : vector<1x8x8x16xbf16> to vector<64x16xbf16>
    %c0_27 = arith.constant 0 : index
    %c0_28 = arith.constant 0 : index
    %20 = vector.load %arg5[%c0_27, %c0_28] : memref<64x64xf32, #tpu.memory_space<vmem>>, vector<64x64xf32>
    %c2_29 = arith.constant 2 : index
    %c0_30 = arith.constant 0 : index
    %c0_31 = arith.constant 0 : index
    %21 = vector.load %arg2[%c2_29, %c0_30, %c0_31] : memref<9x16x64xbf16, #tpu.memory_space<vmem>>, vector<1x16x64xbf16>
    %22 = vector.shape_cast %21 : vector<1x16x64xbf16> to vector<16x64xbf16>
    %cst_32 = arith.constant dense<0.000000e+00> : vector<64x64xf32>
    %23 = tpu.matmul %19, %22, %cst_32 {dimension_numbers = #tpu.dot_dimension_numbers<[1], [0], [0], [1], [0, 0, 1, 1], [], []>} : vector<64x16xbf16>, vector<16x64xbf16>, vector<64x64xf32> -> vector<64x64xf32>
    %24 = arith.addf %20, %23 : vector<64x64xf32>
    %c0_33 = arith.constant 0 : index
    %c0_34 = arith.constant 0 : index
    %25 = vector.load %arg5[%c0_33, %c0_34] : memref<64x64xf32, #tpu.memory_space<vmem>>, vector<64x64xf32>
    tpu.vector_store %arg5[%c0_33, %c0_34], %24 {strides = array<i32>} : memref<64x64xf32, #tpu.memory_space<vmem>>, vector<64x64xf32>,
    %c0_35 = arith.constant 0 : index
    %c1_36 = arith.constant 1 : index
    %c0_37 = arith.constant 0 : index
    %c0_38 = arith.constant 0 : index
    %26 = vector.load %arg1[%c0_35, %c1_36, %c0_37, %c0_38] : memref<3x10x8x16xbf16, #tpu.memory_space<vmem>>, vector<1x8x8x16xbf16>
    %27 = vector.shape_cast %26 : vector<1x8x8x16xbf16> to vector<64x16xbf16>
    %c0_39 = arith.constant 0 : index
    %c0_40 = arith.constant 0 : index
    %28 = vector.load %arg5[%c0_39, %c0_40] : memref<64x64xf32, #tpu.memory_space<vmem>>, vector<64x64xf32>
    %c3 = arith.constant 3 : index
    %c0_41 = arith.constant 0 : index
    %c0_42 = arith.constant 0 : index
    %29 = vector.load %arg2[%c3, %c0_41, %c0_42] : memref<9x16x64xbf16, #tpu.memory_space<vmem>>, vector<1x16x64xbf16>
    %30 = vector.shape_cast %29 : vector<1x16x64xbf16> to vector<16x64xbf16>
    %cst_43 = arith.constant dense<0.000000e+00> : vector<64x64xf32>
    %31 = tpu.matmul %27, %30, %cst_43 {dimension_numbers = #tpu.dot_dimension_numbers<[1], [0], [0], [1], [0, 0, 1, 1], [], []>} : vector<64x16xbf16>, vector<16x64xbf16>, vector<64x64xf32> -> vector<64x64xf32>
    %32 = arith.addf %28, %31 : vector<64x64xf32>
    %c0_44 = arith.constant 0 : index
    %c0_45 = arith.constant 0 : index
    %33 = vector.load %arg5[%c0_44, %c0_45] : memref<64x64xf32, #tpu.memory_space<vmem>>, vector<64x64xf32>
    tpu.vector_store %arg5[%c0_44, %c0_45], %32 {strides = array<i32>} : memref<64x64xf32, #tpu.memory_space<vmem>>, vector<64x64xf32>,
    %c1_46 = arith.constant 1 : index
    %c1_47 = arith.constant 1 : index
    %c0_48 = arith.constant 0 : index
    %c0_49 = arith.constant 0 : index
    %34 = vector.load %arg1[%c1_46, %c1_47, %c0_48, %c0_49] : memref<3x10x8x16xbf16, #tpu.memory_space<vmem>>, vector<1x8x8x16xbf16>
    %35 = vector.shape_cast %34 : vector<1x8x8x16xbf16> to vector<64x16xbf16>
    %c0_50 = arith.constant 0 : index
    %c0_51 = arith.constant 0 : index
    %36 = vector.load %arg5[%c0_50, %c0_51] : memref<64x64xf32, #tpu.memory_space<vmem>>, vector<64x64xf32>
    %c4 = arith.constant 4 : index
    %c0_52 = arith.constant 0 : index
    %c0_53 = arith.constant 0 : index
    %37 = vector.load %arg2[%c4, %c0_52, %c0_53] : memref<9x16x64xbf16, #tpu.memory_space<vmem>>, vector<1x16x64xbf16>
    %38 = vector.shape_cast %37 : vector<1x16x64xbf16> to vector<16x64xbf16>
    %cst_54 = arith.constant dense<0.000000e+00> : vector<64x64xf32>
    %39 = tpu.matmul %35, %38, %cst_54 {dimension_numbers = #tpu.dot_dimension_numbers<[1], [0], [0], [1], [0, 0, 1, 1], [], []>} : vector<64x16xbf16>, vector<16x64xbf16>, vector<64x64xf32> -> vector<64x64xf32>
    %40 = arith.addf %36, %39 : vector<64x64xf32>
    %c0_55 = arith.constant 0 : index
    %c0_56 = arith.constant 0 : index
    %41 = vector.load %arg5[%c0_55, %c0_56] : memref<64x64xf32, #tpu.memory_space<vmem>>, vector<64x64xf32>
    tpu.vector_store %arg5[%c0_55, %c0_56], %40 {strides = array<i32>} : memref<64x64xf32, #tpu.memory_space<vmem>>, vector<64x64xf32>,
    %c2_57 = arith.constant 2 : index
    %c1_58 = arith.constant 1 : index
    %c0_59 = arith.constant 0 : index
    %c0_60 = arith.constant 0 : index
    %42 = vector.load %arg1[%c2_57, %c1_58, %c0_59, %c0_60] : memref<3x10x8x16xbf16, #tpu.memory_space<vmem>>, vector<1x8x8x16xbf16>
    %43 = vector.shape_cast %42 : vector<1x8x8x16xbf16> to vector<64x16xbf16>
    %c0_61 = arith.constant 0 : index
    %c0_62 = arith.constant 0 : index
    %44 = vector.load %arg5[%c0_61, %c0_62] : memref<64x64xf32, #tpu.memory_space<vmem>>, vector<64x64xf32>
    %c5 = arith.constant 5 : index
    %c0_63 = arith.constant 0 : index
    %c0_64 = arith.constant 0 : index
    %45 = vector.load %arg2[%c5, %c0_63, %c0_64] : memref<9x16x64xbf16, #tpu.memory_space<vmem>>, vector<1x16x64xbf16>
    %46 = vector.shape_cast %45 : vector<1x16x64xbf16> to vector<16x64xbf16>
    %cst_65 = arith.constant dense<0.000000e+00> : vector<64x64xf32>
    %47 = tpu.matmul %43, %46, %cst_65 {dimension_numbers = #tpu.dot_dimension_numbers<[1], [0], [0], [1], [0, 0, 1, 1], [], []>} : vector<64x16xbf16>, vector<16x64xbf16>, vector<64x64xf32> -> vector<64x64xf32>
    %48 = arith.addf %44, %47 : vector<64x64xf32>
    %c0_66 = arith.constant 0 : index
    %c0_67 = arith.constant 0 : index
    %49 = vector.load %arg5[%c0_66, %c0_67] : memref<64x64xf32, #tpu.memory_space<vmem>>, vector<64x64xf32>
    tpu.vector_store %arg5[%c0_66, %c0_67], %48 {strides = array<i32>} : memref<64x64xf32, #tpu.memory_space<vmem>>, vector<64x64xf32>,
    %c0_68 = arith.constant 0 : index
    %c2_69 = arith.constant 2 : index
    %c0_70 = arith.constant 0 : index
    %c0_71 = arith.constant 0 : index
    %50 = vector.load %arg1[%c0_68, %c2_69, %c0_70, %c0_71] : memref<3x10x8x16xbf16, #tpu.memory_space<vmem>>, vector<1x8x8x16xbf16>
    %51 = vector.shape_cast %50 : vector<1x8x8x16xbf16> to vector<64x16xbf16>
    %c0_72 = arith.constant 0 : index
    %c0_73 = arith.constant 0 : index
    %52 = vector.load %arg5[%c0_72, %c0_73] : memref<64x64xf32, #tpu.memory_space<vmem>>, vector<64x64xf32>
    %c6 = arith.constant 6 : index
    %c0_74 = arith.constant 0 : index
    %c0_75 = arith.constant 0 : index
    %53 = vector.load %arg2[%c6, %c0_74, %c0_75] : memref<9x16x64xbf16, #tpu.memory_space<vmem>>, vector<1x16x64xbf16>
    %54 = vector.shape_cast %53 : vector<1x16x64xbf16> to vector<16x64xbf16>
    %cst_76 = arith.constant dense<0.000000e+00> : vector<64x64xf32>
    %55 = tpu.matmul %51, %54, %cst_76 {dimension_numbers = #tpu.dot_dimension_numbers<[1], [0], [0], [1], [0, 0, 1, 1], [], []>} : vector<64x16xbf16>, vector<16x64xbf16>, vector<64x64xf32> -> vector<64x64xf32>
    %56 = arith.addf %52, %55 : vector<64x64xf32>
    %c0_77 = arith.constant 0 : index
    %c0_78 = arith.constant 0 : index
    %57 = vector.load %arg5[%c0_77, %c0_78] : memref<64x64xf32, #tpu.memory_space<vmem>>, vector<64x64xf32>
    tpu.vector_store %arg5[%c0_77, %c0_78], %56 {strides = array<i32>} : memref<64x64xf32, #tpu.memory_space<vmem>>, vector<64x64xf32>,
    %c1_79 = arith.constant 1 : index
    %c2_80 = arith.constant 2 : index
    %c0_81 = arith.constant 0 : index
    %c0_82 = arith.constant 0 : index
    %58 = vector.load %arg1[%c1_79, %c2_80, %c0_81, %c0_82] : memref<3x10x8x16xbf16, #tpu.memory_space<vmem>>, vector<1x8x8x16xbf16>
    %59 = vector.shape_cast %58 : vector<1x8x8x16xbf16> to vector<64x16xbf16>
    %c0_83 = arith.constant 0 : index
    %c0_84 = arith.constant 0 : index
    %60 = vector.load %arg5[%c0_83, %c0_84] : memref<64x64xf32, #tpu.memory_space<vmem>>, vector<64x64xf32>
    %c7 = arith.constant 7 : index
    %c0_85 = arith.constant 0 : index
    %c0_86 = arith.constant 0 : index
    %61 = vector.load %arg2[%c7, %c0_85, %c0_86] : memref<9x16x64xbf16, #tpu.memory_space<vmem>>, vector<1x16x64xbf16>
    %62 = vector.shape_cast %61 : vector<1x16x64xbf16> to vector<16x64xbf16>
    %cst_87 = arith.constant dense<0.000000e+00> : vector<64x64xf32>
    %63 = tpu.matmul %59, %62, %cst_87 {dimension_numbers = #tpu.dot_dimension_numbers<[1], [0], [0], [1], [0, 0, 1, 1], [], []>} : vector<64x16xbf16>, vector<16x64xbf16>, vector<64x64xf32> -> vector<64x64xf32>
    %64 = arith.addf %60, %63 : vector<64x64xf32>
    %c0_88 = arith.constant 0 : index
    %c0_89 = arith.constant 0 : index
    %65 = vector.load %arg5[%c0_88, %c0_89] : memref<64x64xf32, #tpu.memory_space<vmem>>, vector<64x64xf32>
    tpu.vector_store %arg5[%c0_88, %c0_89], %64 {strides = array<i32>} : memref<64x64xf32, #tpu.memory_space<vmem>>, vector<64x64xf32>,
    %c2_90 = arith.constant 2 : index
    %c2_91 = arith.constant 2 : index
    %c0_92 = arith.constant 0 : index
    %c0_93 = arith.constant 0 : index
    %66 = vector.load %arg1[%c2_90, %c2_91, %c0_92, %c0_93] : memref<3x10x8x16xbf16, #tpu.memory_space<vmem>>, vector<1x8x8x16xbf16>
    %67 = vector.shape_cast %66 : vector<1x8x8x16xbf16> to vector<64x16xbf16>
    %c0_94 = arith.constant 0 : index
    %c0_95 = arith.constant 0 : index
    %68 = vector.load %arg5[%c0_94, %c0_95] : memref<64x64xf32, #tpu.memory_space<vmem>>, vector<64x64xf32>
    %c8 = arith.constant 8 : index
    %c0_96 = arith.constant 0 : index
    %c0_97 = arith.constant 0 : index
    %69 = vector.load %arg2[%c8, %c0_96, %c0_97] : memref<9x16x64xbf16, #tpu.memory_space<vmem>>, vector<1x16x64xbf16>
    %70 = vector.shape_cast %69 : vector<1x16x64xbf16> to vector<16x64xbf16>
    %cst_98 = arith.constant dense<0.000000e+00> : vector<64x64xf32>
    %71 = tpu.matmul %67, %70, %cst_98 {dimension_numbers = #tpu.dot_dimension_numbers<[1], [0], [0], [1], [0, 0, 1, 1], [], []>} : vector<64x16xbf16>, vector<16x64xbf16>, vector<64x64xf32> -> vector<64x64xf32>
    %72 = arith.addf %68, %71 : vector<64x64xf32>
    %c0_99 = arith.constant 0 : index
    %c0_100 = arith.constant 0 : index
    %73 = vector.load %arg5[%c0_99, %c0_100] : memref<64x64xf32, #tpu.memory_space<vmem>>, vector<64x64xf32>
    tpu.vector_store %arg5[%c0_99, %c0_100], %72 {strides = array<i32>} : memref<64x64xf32, #tpu.memory_space<vmem>>, vector<64x64xf32>,
    %c0_101 = arith.constant 0 : index
    %c0_102 = arith.constant 0 : index
    %74 = vector.load %arg5[%c0_101, %c0_102] : memref<64x64xf32, #tpu.memory_space<vmem>>, vector<64x64xf32>
    %75 = vector.shape_cast %74 : vector<64x64xf32> to vector<1x8x8x64xf32>
    %76 = arith.truncf %75 : vector<1x8x8x64xf32> to vector<1x8x8x64xbf16>
    %c0_103 = arith.constant 0 : index
    %c0_104 = arith.constant 0 : index
    %c0_105 = arith.constant 0 : index
    %c0_106 = arith.constant 0 : index
    %77 = vector.load %arg3[%c0_103, %c0_104, %c0_105, %c0_106] : memref<1x8x8x64xbf16, #tpu.memory_space<vmem>>, vector<1x8x8x64xbf16>
    tpu.vector_store %arg3[%c0_103, %c0_104, %c0_105, %c0_106], %76 {strides = array<i32>} : memref<1x8x8x64xbf16, #tpu.memory_space<vmem>>, vector<1x8x8x64xbf16>,
    %cst_107 = arith.constant dense<0.000000e+00> : vector<64xf32>
    %78 = vector.multi_reduction <add>, %74, %cst_107 [0] : vector<64x64xf32> to vector<64xf32>
    %79 = vector.shape_cast %78 : vector<64xf32> to vector<1x64xf32>
    %80 = arith.mulf %74, %74 : vector<64x64xf32>
    %cst_108 = arith.constant dense<0.000000e+00> : vector<64xf32>
    %81 = vector.multi_reduction <add>, %80, %cst_108 [0] : vector<64x64xf32> to vector<64xf32>
    %82 = vector.shape_cast %81 : vector<64xf32> to vector<1x64xf32>
    %83 = tpu.concatenate %79, %82 in 0 : vector<1x64xf32>, vector<1x64xf32> -> vector<2x64xf32>
    %c0_109 = arith.constant 0 : index
    %c0_110 = arith.constant 0 : index
    %84 = vector.load %arg4[%c0_109, %c0_110] : memref<2x64xf32, #tpu.memory_space<vmem>>, vector<2x64xf32>
    tpu.vector_store %arg4[%c0_109, %c0_110], %83 {strides = array<i32>} : memref<2x64xf32, #tpu.memory_space<vmem>>, vector<2x64xf32>,
    return
  }
  func.func @transform_0(%arg0: i32) -> (i32, i32, i32, i32) {
    %c0_i32 = arith.constant 0 : i32
    %c0_i32_0 = arith.constant 0 : i32
    %c0_i32_1 = arith.constant 0 : i32
    %c0_i32_2 = arith.constant 0 : i32
    %c0_i32_3 = arith.constant 0 : i32
    return %c0_i32, %c0_i32_0, %c0_i32_1, %c0_i32_2 : i32, i32, i32, i32
  }
  func.func @transform_1(%arg0: i32) -> (i32, i32, i32) {
    %c0_i32 = arith.constant 0 : i32
    %c0_i32_0 = arith.constant 0 : i32
    %c0_i32_1 = arith.constant 0 : i32
    return %c0_i32, %c0_i32_0, %arg0 : i32, i32, i32
  }
  func.func @transform_2(%arg0: i32) -> (i32, i32, i32, i32) {
    %c0_i32 = arith.constant 0 : i32
    %c0_i32_0 = arith.constant 0 : i32
    %c0_i32_1 = arith.constant 0 : i32
    %c0_i32_2 = arith.constant 0 : i32
    return %c0_i32, %c0_i32_0, %c0_i32_1, %arg0 : i32, i32, i32, i32
  }
  func.func @transform_3(%arg0: i32) -> (i32, i32) {
    %c0_i32 = arith.constant 0 : i32
    %c0_i32_0 = arith.constant 0 : i32
    return %c0_i32, %arg0 : i32, i32
  }
}

module attributes {stable_mosaic.version = 11 : i64} {
  func.func @_mm_kernel(%arg0: i32, %arg1: i32, %arg2: i32, %arg3: memref<8x128xbf16, #tpu.memory_space<vmem>>, %arg4: memref<128x64xbf16, #tpu.memory_space<vmem>>, %arg5: memref<1x64xf32, #tpu.memory_space<vmem>>, %arg6: memref<8x64xbf16, #tpu.memory_space<vmem>>, %arg7: memref<8x64xf32, #tpu.memory_space<vmem>>) attributes {dimension_semantics = [#tpu.dimension_semantics<parallel>, #tpu.dimension_semantics<parallel>, #tpu.dimension_semantics<arbitrary>], iteration_bounds = array<i64: 1, 1, 1>, scalar_prefetch = 0 : i64, scratch_operands = 1 : i64, tpu.core_type = #tpu.core_type<tc>, window_params = [{transform_indices = @transform_0, window_bounds = array<i64: 8, 128>}, {transform_indices = @transform_1, window_bounds = array<i64: 128, 64>}, {transform_indices = @transform_2, window_bounds = array<i64: 1, 64>}, {transform_indices = @transform_3, window_bounds = array<i64: 8, 64>}]} {
    %c0_i32 = arith.constant 0 : i32
    %0 = arith.cmpi eq, %arg2, %c0_i32 : i32
    %1 = arith.extui %0 : i1 to i32
    %c0_i32_0 = arith.constant 0 : i32
    %2 = arith.cmpi ne, %1, %c0_i32_0 : i32
    scf.if %2 {
      %cst_10 = arith.constant 0.000000e+00 : f32
      %12 = vector.broadcast %cst_10 : f32 to vector<8x64xf32>
      %c0_11 = arith.constant 0 : index
      %c0_12 = arith.constant 0 : index
      %13 = vector.load %arg7[%c0_11, %c0_12] : memref<8x64xf32, #tpu.memory_space<vmem>>, vector<8x64xf32>
      tpu.vector_store %arg7[%c0_11, %c0_12], %12 {strides = array<i32>} : memref<8x64xf32, #tpu.memory_space<vmem>>, vector<8x64xf32>,
    } else {
    }
    %c0 = arith.constant 0 : index
    %c0_1 = arith.constant 0 : index
    %3 = vector.load %arg7[%c0, %c0_1] : memref<8x64xf32, #tpu.memory_space<vmem>>, vector<8x64xf32>
    %c0_2 = arith.constant 0 : index
    %c0_3 = arith.constant 0 : index
    %4 = vector.load %arg3[%c0_2, %c0_3] : memref<8x128xbf16, #tpu.memory_space<vmem>>, vector<8x128xbf16>
    %c0_4 = arith.constant 0 : index
    %c0_5 = arith.constant 0 : index
    %5 = vector.load %arg4[%c0_4, %c0_5] : memref<128x64xbf16, #tpu.memory_space<vmem>>, vector<128x64xbf16>
    %cst = arith.constant dense<0.000000e+00> : vector<8x64xf32>
    %6 = tpu.matmul %4, %5, %cst {dimension_numbers = #tpu.dot_dimension_numbers<[1], [0], [0], [1], [0, 0, 1, 1], [], []>} : vector<8x128xbf16>, vector<128x64xbf16>, vector<8x64xf32> -> vector<8x64xf32>
    %7 = arith.addf %3, %6 : vector<8x64xf32>
    %c0_6 = arith.constant 0 : index
    %c0_7 = arith.constant 0 : index
    %8 = vector.load %arg7[%c0_6, %c0_7] : memref<8x64xf32, #tpu.memory_space<vmem>>, vector<8x64xf32>
    tpu.vector_store %arg7[%c0_6, %c0_7], %7 {strides = array<i32>} : memref<8x64xf32, #tpu.memory_space<vmem>>, vector<8x64xf32>,
    %c0_i32_8 = arith.constant 0 : i32
    %9 = arith.cmpi eq, %arg2, %c0_i32_8 : i32
    %10 = arith.extui %9 : i1 to i32
    %c0_i32_9 = arith.constant 0 : i32
    %11 = arith.cmpi ne, %10, %c0_i32_9 : i32
    scf.if %11 {
      %c0_10 = arith.constant 0 : index
      %c0_11 = arith.constant 0 : index
      %12 = vector.load %arg7[%c0_10, %c0_11] : memref<8x64xf32, #tpu.memory_space<vmem>>, vector<8x64xf32>
      %c0_12 = arith.constant 0 : index
      %c0_13 = arith.constant 0 : index
      %13 = vector.load %arg5[%c0_12, %c0_13] : memref<1x64xf32, #tpu.memory_space<vmem>>, vector<1x64xf32>
      %14 = vector.broadcast %13 : vector<1x64xf32> to vector<8x64xf32>
      %15 = arith.addf %12, %14 : vector<8x64xf32>
      %cst_14 = arith.constant 0.000000e+00 : f32
      %16 = vector.broadcast %cst_14 : f32 to vector<8x64xf32>
      %17 = arith.maximumf %15, %16 : vector<8x64xf32>
      %18 = arith.truncf %17 : vector<8x64xf32> to vector<8x64xbf16>
      %c0_15 = arith.constant 0 : index
      %c0_16 = arith.constant 0 : index
      %19 = vector.load %arg6[%c0_15, %c0_16] : memref<8x64xbf16, #tpu.memory_space<vmem>>, vector<8x64xbf16>
      tpu.vector_store %arg6[%c0_15, %c0_16], %18 {strides = array<i32>} : memref<8x64xbf16, #tpu.memory_space<vmem>>, vector<8x64xbf16>,
    } else {
    }
    return
  }
  func.func @transform_0(%arg0: i32, %arg1: i32, %arg2: i32) -> (i32, i32) {
    %c0_i32 = arith.constant 0 : i32
    return %arg0, %arg2 : i32, i32
  }
  func.func @transform_1(%arg0: i32, %arg1: i32, %arg2: i32) -> (i32, i32) {
    %c0_i32 = arith.constant 0 : i32
    return %arg2, %arg1 : i32, i32
  }
  func.func @transform_2(%arg0: i32, %arg1: i32, %arg2: i32) -> (i32, i32) {
    %c0_i32 = arith.constant 0 : i32
    %c0_i32_0 = arith.constant 0 : i32
    return %c0_i32, %arg1 : i32, i32
  }
  func.func @transform_3(%arg0: i32, %arg1: i32, %arg2: i32) -> (i32, i32) {
    %c0_i32 = arith.constant 0 : i32
    return %arg0, %arg1 : i32, i32
  }
}

</mosaic_0001>

<bundles_post_ra>
// kernel: tpu_custom_call.1
= control target key start
LH: loop header
LB: loop body
LE: loop exit
PB: predicated region body
PF: predicated region fallthrough
CT: control target
= control target key end

     0   :  { %9 = vsyncpa [#allocation4], 0  ;;  %s2022_s0 = inlined_call_operand.hbm [shape: bf16[3,10,8,16], index: 0, kind: input, shape index: {}]   ;;  %s2023_s1 = inlined_call_operand.hbm [shape: bf16[9,16,64], index: 1, kind: input, shape index: {}]   ;;  %s2024_s2 = inlined_call_operand.hbm [shape: bf16[1,8,8,64], index: 2, kind: output, shape index: {0}]   ;;  %s2025_s3 = inlined_call_operand.hbm [shape: f32[2,64], index: 3, kind: output, shape index: {1}]  }
   0x1   :  { %10 = vsyncpa [#allocation7], 0 }
   0x2   :  { %11 = vsyncpa [#allocation5], 0 }
   0x3   :  { %12 = vsyncpa [#allocation10], 0  ;;  %s1780_s12 = smov [#allocation3]   ;;  %s1684_s16 = scalar_lea.hbm %s2022_s0, 1920 }
   0x4   :  { %s18_s13 = sshll.u32 %s1780_s12, 4  ;;  %p1685_p0 = scmp.ne.s32.totalorder %s2022_s0, %s1684_s16  ;;  %s19_s13 = int_to_ptr.vmem [resolvable:$true] %s18_s13 }
   0x5   :  { %p1688_p1 = scmp.lt.u32.totalorder %s1684_s16, %s2022_s0 }
   0x7   :  { %p1690_p2 = pnand %p1688_p1, %p1685_p0 }
   0x9   :  { %1693 = shalt.err (!%p1690_p2)
}
   0xa   :  { %s1694_s21 = scalar_lea.vmem %s19_s13, 1920  ;;  %p1699_p4 = scmp.lt.s32.totalorder %s19_s13, %s19_s13 }
   0xb   :  { %p1695_p3 = scmp.ne.s32.totalorder %s19_s13, %s1694_s21  ;;  %p1700_p5 = scmp.lt.s32.totalorder %s1694_s21, %s1694_s21 }
   0xd   :  { %p1701_p6 = por %p1700_p5, %p1699_p4 }
   0xf   :  { %p1702_p7 = pnand %p1701_p6, %p1695_p3 }
  0x11   :  { %1705 = shalt.err (!%p1702_p7)
}
  0x12   :  { %s1781_s22 = smov 64   ;;  %s1782_s23 = smov 4  }
  0x13   :  { %24 = dma.hbm_to_vmem [thread:$0]  %s2022_s0, 1920, %s19_s13, [#allocation4], %s1781_s22, %s1781_s22, %s1782_s23  }
  0x14   :  { %s1783_s26 = smov [#allocation6]   ;;  %s1706_s30 = scalar_lea.hbm %s2023_s1, 1152 }
  0x15   :  { %s30_s27 = sshll.u32 %s1783_s26, 4  ;;  %p1707_p8 = scmp.ne.s32.totalorder %s2023_s1, %s1706_s30  ;;  %s31_s27 = int_to_ptr.vmem [resolvable:$true] %s30_s27 }
  0x16   :  { %p1710_p9 = scmp.lt.u32.totalorder %s1706_s30, %s2023_s1 }
  0x18   :  { %p1712_p10 = pnand %p1710_p9, %p1707_p8 }
  0x1a   :  { %1715 = shalt.err (!%p1712_p10)
}
  0x1b   :  { %s1716_s8 = scalar_lea.vmem %s31_s27, 1152  ;;  %p1721_p12 = scmp.lt.s32.totalorder %s31_s27, %s31_s27 }
  0x1c   :  { %p1717_p11 = scmp.ne.s32.totalorder %s31_s27, %s1716_s8  ;;  %p1722_p13 = scmp.lt.s32.totalorder %s1716_s8, %s1716_s8 }
  0x1e   :  { %p1723_p0 = por %p1722_p13, %p1721_p12 }
  0x20   :  { %p1724_p1 = pnand %p1723_p0, %p1717_p11 }
  0x22   :  { %1727 = shalt.err (!%p1724_p1)
}
  0x23   :  { %36 = dma.hbm_to_vmem [thread:$0]  %s2023_s1, 1152, %s31_s27, [#allocation7], %s1781_s22, %s1781_s22, %s1782_s23  }
  0x24   :  { %1772 = dma.done.wait [#allocation4], 1920  }
  0x25   :  { %1773 = vsyncadd [#allocation4], 4294965376 }
  0x26   :  { %1774 = dma.done.wait [#allocation7], 1152  }
  0x27   :  { %1775 = vsyncadd [#allocation7], 4294966144  ;;  %vm44_vm0 = vcmask 523264   ;;  %v1784_v0 = vmov 0.0   ;;  %v1639_v1 = vld [vmem:[#allocation6] sm:$0xff]   ;;  %v1640_v2 = vld [vmem:[#allocation3] sm:$0xff]  }
  0x28   :  { %47 = vst.msk [vmem:[#allocation2 + $0x10] sm:$0xff] %vm44_vm0, %v1784_v0  ;;  %45 = vst.msk [vmem:[#allocation2] sm:$0xff] %vm44_vm0, %v1784_v0  ;;  %vm97_vm1 = vcmask 130048   ;;  %1540 = vmatprep.subr.bf16.mxu0 %v1639_v1  ;;  %1630 = vmatprep.subr.bf16.mxu1 %v1639_v1  ;;  %v1641_v3 = vld [vmem:[#allocation3 + $0x10] sm:$0xff]   ;;  %v1642_v4 = vld [vmem:[#allocation3 + $0x8] sm:$0xff]   ;;  %vm1319_vm2 = vcmask 519168  }
  0x29   :  { %46 = vst.msk [vmem:[#allocation2 + $0x8] sm:$0xff] %vm44_vm0, %v1784_v0  ;;  %48 = vst.msk [vmem:[#allocation2 + $0x18] sm:$0xff] %vm44_vm0, %v1784_v0  ;;  %1541 = vmatpush3.bf16.msra.mxu0 %v1639_v1  ;;  %1631 = vmatpush3.bf16.msra.mxu1 %v1639_v1  ;;  %v1643_v5 = vld [vmem:[#allocation3 + $0x18] sm:$0xff]   ;;  %v1644_v6 = vld [vmem:[#allocation6 + $0x8] sm:$0xff]   ;;  %s1785_s1 = smov [#allocation8]  }
  0x2a   :  { %49 = vst.msk [vmem:[#allocation2 + $0x20] sm:$0xff] %vm44_vm0, %v1784_v0  ;;  %50 = vst.msk [vmem:[#allocation2 + $0x28] sm:$0xff] %vm44_vm0, %v1784_v0  ;;  %1542 = vmatprep.mubr.msk.bf16.mxu0 %vm97_vm1, %v1640_v2  ;;  %1546 = vmatprep.mubr.msk.bf16.mxu1 %vm97_vm1, %v1641_v3  ;;  %v1645_v7 = vld [vmem:[#allocation3 + $0x28] sm:$0xff]   ;;  %v1648_v9 = vld [vmem:[#allocation6 + $0x18] sm:$0xff]   ;;  %s1387_s10 = sshll.u32 %s1785_s1, 4  ;;  %s1388_s10 = int_to_ptr.vmem [resolvable:$true] %s1387_s10 }
  0x2b   :  { %51 = vst.msk [vmem:[#allocation2 + $0x30] sm:$0xff] %vm44_vm0, %v1784_v0  ;;  %52 = vst.msk [vmem:[#allocation2 + $0x38] sm:$0xff] %vm44_vm0, %v1784_v0  ;;  %1550 = vmatprep.subr.bf16.mxu1 %v1644_v6  ;;  %v1647_v8 = vld [vmem:[#allocation6 + $0x10] sm:$0xff]   ;;  %v1646_v10 = vld [vmem:[#allocation3 + $0x30] sm:$0xff]   ;;  %s1728_s11 = scalar_lea.vmem %s1388_s10, 512  ;;  %p1733_p3 = scmp.lt.s32.totalorder %s1388_s10, %s1388_s10 }
  0x2c   :  { %1543 = vmatmul.mubr.msk.bf16.vlgmr.msra.gmra.mrb[0].mxu0 %vm97_vm1, %v1642_v4  ;;  %1547 = vmatmul.mubr.msk.bf16.vlgmr.msra.gmra.mrb[0].mxu1 %vm97_vm1, %v1643_v5  ;;  %v1649_v11 = vld [vmem:[#allocation3 + $0x38] sm:$0xff]   ;;  %v1651_v12 = vld [vmem:[#allocation3 + $0x50] sm:$0xff]   ;;  %v1654_v15 = vld [vmem:[#allocation3 + $0x60] sm:$0xff]   ;;  %p1729_p2 = scmp.ne.s32.totalorder %s1388_s10, %s1728_s11  ;;  %p1734_p4 = scmp.lt.s32.totalorder %s1728_s11, %s1728_s11 }
  0x2d   :  { %1551 = vmatpush3.bf16.msra.mxu1 %v1644_v6  ;;  %1552 = vmatprep.mubr.msk.bf16.mxu1 %vm97_vm1, %v1645_v7  ;;  %v1652_v13 = vld [vmem:[#allocation3 + $0x58] sm:$0xff]   ;;  %v1650_v16 = vld [vmem:[#allocation3 + $0x40] sm:$0xff]   ;;  %v1655_v19 = vld [vmem:[#allocation3 + $0x68] sm:$0xff]  }
  0x2e   :  { %1560 = vmatprep.subr.bf16.mxu0 %v1647_v8  ;;  %1570 = vmatprep.subr.bf16.mxu1 %v1648_v9  ;;  %v1653_v14 = vld [vmem:[#allocation6 + $0x20] sm:$0xff]   ;;  %v1656_v17 = vld [vmem:[#allocation3 + $0x4] sm:$0xff]   ;;  %v1661_v20 = vld [vmem:[#allocation3 + $0x2c] sm:$0xff]   ;;  %p1735_p5 = por %p1734_p4, %p1733_p3 }
  0x2f   :  { %1561 = vmatpush3.bf16.msra.mxu0 %v1647_v8  ;;  %1562 = vmatprep.mubr.msk.bf16.mxu0 %vm97_vm1, %v1651_v12  ;;  %v1658_v18 = vld [vmem:[#allocation6 + $0x28] sm:$0xff]   ;;  %v1663_v21 = vld [vmem:[#allocation6 + $0x30] sm:$0xff]   ;;  %v1659_v23 = vld [vmem:[#allocation3 + $0x14] sm:$0xff]  }
  0x30   :  { %1580 = vmatprep.subr.bf16.mxu0 %v1653_v14  ;;  %v1657_v22 = vld [vmem:[#allocation3 + $0xc] sm:$0xff]   ;;  %v1662_v24 = vld [vmem:[#allocation3 + $0x34] sm:$0xff]   ;;  %v1664_v25 = vld [vmem:[#allocation3 + $0x3c] sm:$0xff]   ;;  %p1736_p6 = pnand %p1735_p5, %p1729_p2 }
  0x31   :  { %v1668_v26 = vld [vmem:[#allocation6 + $0x38] sm:$0xff]   ;;  %v1660_v27 = vld [vmem:[#allocation3 + $0x1c] sm:$0xff]   ;;  %v1665_v30 = vld [vmem:[#allocation3 + $0x44] sm:$0xff]  }
  0x32   :  { %v1673_v28 = vld [vmem:[#allocation6 + $0x40] sm:$0xff]   ;;  %v1671_v31 = vld [vmem:[#allocation3 + $0x8] sm:$0xff]   ;;  %v1672_v34 = vld [vmem:[#allocation3 + $0x10] sm:$0xff]  }
  0x33   :  { %v1666_v29 = vld [vmem:[#allocation3 + $0x54] sm:$0xff]   ;;  %v1667_v32 = vld [vmem:[#allocation3 + $0x5c] sm:$0xff]   ;;  %v1669_v33 = vld [vmem:[#allocation3 + $0x64] sm:$0xff]  }
  0x34   :  { %1553 = vmatmul.mubr.msk.bf16.vlgmr.msra.gmra.mrb[4].mxu1 %vm97_vm1, %v1646_v10  ;;  %1563 = vmatmul.mubr.msk.bf16.vlgmr.msra.gmra.mrb[4].mxu0 %vm97_vm1, %v1652_v13  ;;  %v1674_v35 = vld [vmem:[#allocation3 + $0x18] sm:$0xff]   ;;  %v1670_v36 = vld [vmem:[#allocation3 + $0x6c] sm:$0xff]   ;;  %v1675_v38 = vld [vmem:[#allocation3 + $0x20] sm:$0xff]  }
  0x35   :  { %1571 = vmatpush3.bf16.msra.mxu1 %v1648_v9  ;;  %1556 = vmatprep.mubr.msk.bf16.mxu1 %vm97_vm1, %v1649_v11  ;;  %v1676_v37 = vld [vmem:[#allocation3 + $0x30] sm:$0xff]   ;;  %v1680_v39 = vld [vmem:[#allocation3 + $0x58] sm:$0xff]   ;;  %v1678_v41 = vld [vmem:[#allocation3 + $0x40] sm:$0xff]  }
  0x36   :  { %1566 = vmatprep.mubr.msk.bf16.mxu0 %vm97_vm1, %v1654_v15  ;;  %1581 = vmatpush3.bf16.msra.mxu0 %v1653_v14  ;;  %v1677_v40 = vld [vmem:[#allocation3 + $0x38] sm:$0xff]   ;;  %v1681_v42 = vld [vmem:[#allocation3 + $0x60] sm:$0xff]   ;;  %v1682_v43 = vld [vmem:[#allocation3 + $0x68] sm:$0xff]  }
  0x37   :  { %1590 = vmatprep.subr.bf16.mxu1 %v1658_v18  ;;  %1600 = vmatprep.subr.bf16.mxu0 %v1663_v21  ;;  %v1679_v44 = vld [vmem:[#allocation3 + $0x48] sm:$0xff]   ;;  %v1683_v45 = vld [vmem:[#allocation3 + $0x70] sm:$0xff]   ;;  %v61_v48 = vld [vmem:[#allocation2] sm:$0xff] }
  0x38   :  { %v63_v46 = vld [vmem:[#allocation2 + $0x10] sm:$0xff]  ;;  %v65_v49 = vld [vmem:[#allocation2 + $0x20] sm:$0xff]  ;;  %v64_v52 = vld [vmem:[#allocation2 + $0x18] sm:$0xff] }
  0x39   :  { %v67_v47 = vld [vmem:[#allocation2 + $0x30] sm:$0xff]  ;;  %v68_v53 = vld [vmem:[#allocation2 + $0x38] sm:$0xff]  ;;  %v62_v58 = vld [vmem:[#allocation2 + $0x8] sm:$0xff] }
  0x3a   :  { %v66_v59 = vld [vmem:[#allocation2 + $0x28] sm:$0xff] }
  0x3c   :  { %1557 = vmatmul.mubr.msk.bf16.gmra.mrb[8].mxu1 %vm97_vm1, %v1650_v16  ;;  %1567 = vmatmul.mubr.msk.bf16.gmra.mrb[8].mxu0 %vm97_vm1, %v1655_v19 }
  0x3d   :  { %1572 = vmatprep.mubr.msk.bf16.mxu1 %vm97_vm1, %v1656_v17  ;;  %1582 = vmatprep.mubr.msk.bf16.mxu0 %vm97_vm1, %v1661_v20 }
  0x44   :  { %1573 = vmatmul.mubr.msk.bf16.vlgmr.msra.gmra.mrb[12].mxu1 %vm97_vm1, %v1657_v22  ;;  %1583 = vmatmul.mubr.msk.bf16.vlgmr.msra.gmra.mrb[12].mxu0 %vm97_vm1, %v1662_v24 }
  0x45   :  { %1576 = vmatprep.mubr.msk.bf16.mxu1 %vm97_vm1, %v1659_v23  ;;  %1591 = vmatpush3.bf16.msra.mxu1 %v1658_v18 }
  0x46   :  { %1610 = vmatprep.subr.bf16.mxu1 %v1668_v26  ;;  %1586 = vmatprep.mubr.msk.bf16.mxu0 %vm97_vm1, %v1664_v25 }
  0x47   :  { %1601 = vmatpush3.bf16.msra.mxu0 %v1663_v21 }
  0x48   :  { %1620 = vmatprep.subr.bf16.mxu0 %v1673_v28 }
  0x4c   :  { %1577 = vmatmul.mubr.msk.bf16.gmra.mrb[16].mxu1 %vm97_vm1, %v1660_v27  ;;  %1587 = vmatmul.mubr.msk.bf16.gmra.mrb[16].mxu0 %vm97_vm1, %v1665_v30 }
  0x4d   :  { %1592 = vmatprep.mubr.msk.bf16.mxu1 %vm97_vm1, %v1666_v29  ;;  %1602 = vmatprep.mubr.msk.bf16.mxu0 %vm97_vm1, %v1671_v31 }
  0x54   :  { %1593 = vmatmul.mubr.msk.bf16.vlgmr.msra.gmra.mrb[20].mxu1 %vm97_vm1, %v1667_v32  ;;  %1603 = vmatmul.mubr.msk.bf16.vlgmr.msra.gmra.mrb[20].mxu0 %vm97_vm1, %v1672_v34 }
  0x55   :  { %1596 = vmatprep.mubr.msk.bf16.mxu1 %vm97_vm1, %v1669_v33  ;;  %1611 = vmatpush3.bf16.msra.mxu1 %v1668_v26 }
  0x56   :  { %1606 = vmatprep.mubr.msk.bf16.mxu0 %vm97_vm1, %v1674_v35  ;;  %1621 = vmatpush3.bf16.msra.mxu0 %v1673_v28 }
  0x5c   :  { %1597 = vmatmul.mubr.msk.bf16.gmra.mrb[24].mxu1 %vm97_vm1, %v1670_v36  ;;  %1607 = vmatmul.mubr.msk.bf16.gmra.mrb[24].mxu0 %vm97_vm1, %v1675_v38 }
  0x5d   :  { %1612 = vmatprep.mubr.msk.bf16.mxu1 %vm97_vm1, %v1676_v37  ;;  %1622 = vmatprep.mubr.msk.bf16.mxu0 %vm97_vm1, %v1680_v39 }
  0x64   :  { %1613 = vmatmul.mubr.msk.bf16.vlgmr.msra.gmra.mrb[28].mxu1 %vm97_vm1, %v1677_v40  ;;  %1623 = vmatmul.mubr.msk.bf16.vlgmr.msra.gmra.mrb[28].mxu0 %vm97_vm1, %v1681_v42 }
  0x65   :  { %1616 = vmatprep.mubr.msk.bf16.mxu1 %vm97_vm1, %v1678_v41  ;;  %1626 = vmatprep.mubr.msk.bf16.mxu0 %vm97_vm1, %v1682_v43 }
  0x6c   :  { %1617 = vmatmul.mubr.msk.bf16.gmra.mrb[32].mxu1 %vm97_vm1, %v1679_v44  ;;  %1627 = vmatmul.mubr.msk.bf16.gmra.mrb[32].mxu0 %vm97_vm1, %v1683_v45 }
  0xff   :  { %v1544_v50 = vpop.f32.mrb[0].mxu0  ;;  %v1548_v51 = vpop.f32.mrb[0].mxu1 }
 0x100   :  { %v177_v54 = vadd.f32 %v1544_v50, %v63_v46  ;;  %v181_v55 = vadd.f32 %v1548_v51, %v67_v47  ;;  %v144_v56 = vpop.f32.mrb[1].mxu0  ;;  %v160_v57 = vpop.f32.mrb[1].mxu1 }
 0x101   :  { %v175_v60 = vadd.f32 %v144_v56, %v61_v48  ;;  %v179_v61 = vadd.f32 %v160_v57, %v65_v49  ;;  %v1545_v62 = vpop.f32.mrb[2].mxu0  ;;  %v1549_v63 = vpop.f32.mrb[2].mxu1 }
 0x102   :  { %185 = vst.msk [vmem:[#allocation2 + $0x10] sm:$0xff] %vm44_vm0, %v177_v54  ;;  %189 = vst.msk [vmem:[#allocation2 + $0x30] sm:$0xff] %vm44_vm0, %v181_v55  ;;  %v178_v0 = vadd.f32 %v1545_v62, %v64_v52  ;;  %v182_v1 = vadd.f32 %v1549_v63, %v68_v53  ;;  %v147_v2 = vpop.f32.mrb[3].mxu0  ;;  %v163_v3 = vpop.f32.mrb[3].mxu1 }
 0x103   :  { %183 = vst.msk [vmem:[#allocation2] sm:$0xff] %vm44_vm0, %v175_v60  ;;  %187 = vst.msk [vmem:[#allocation2 + $0x20] sm:$0xff] %vm44_vm0, %v179_v61  ;;  %v176_v4 = vadd.f32 %v147_v2, %v62_v58  ;;  %v180_v5 = vadd.f32 %v163_v3, %v66_v59 }
 0x104   :  { %186 = vst.msk [vmem:[#allocation2 + $0x18] sm:$0xff] %vm44_vm0, %v178_v0  ;;  %190 = vst.msk [vmem:[#allocation2 + $0x38] sm:$0xff] %vm44_vm0, %v182_v1 }
 0x105   :  { %184 = vst.msk [vmem:[#allocation2 + $0x8] sm:$0xff] %vm44_vm0, %v176_v4  ;;  %188 = vst.msk [vmem:[#allocation2 + $0x28] sm:$0xff] %vm44_vm0, %v180_v5 }
 0x107   :  { %v1554_v6 = vpop.f32.mrb[4].mxu1  ;;  %v1564_v10 = vpop.f32.mrb[4].mxu0 }
 0x108   :  { %v283_v7 = vpop.f32.mrb[5].mxu1  ;;  %v422_v14 = vpop.f32.mrb[5].mxu0 }
 0x109   :  { %v202_v8 = vld [vmem:[#allocation2 + $0x10] sm:$0xff]  ;;  %v1555_v9 = vpop.f32.mrb[6].mxu1  ;;  %v1565_v17 = vpop.f32.mrb[6].mxu0 }
 0x10a   :  { %v316_v11 = vadd.f32 %v1554_v6, %v202_v8  ;;  %v200_v12 = vld [vmem:[#allocation2] sm:$0xff]  ;;  %v286_v13 = vpop.f32.mrb[7].mxu1  ;;  %v425_v20 = vpop.f32.mrb[7].mxu0  ;;  %v206_v22 = vld [vmem:[#allocation2 + $0x30] sm:$0xff] }
 0x10b   :  { %v314_v15 = vadd.f32 %v283_v7, %v200_v12  ;;  %v203_v16 = vld [vmem:[#allocation2 + $0x18] sm:$0xff]  ;;  %v204_v25 = vld [vmem:[#allocation2 + $0x20] sm:$0xff] }
 0x10c   :  { %324 = vst.msk [vmem:[#allocation2 + $0x10] sm:$0xff] %vm44_vm0, %v316_v11  ;;  %v317_v18 = vadd.f32 %v1555_v9, %v203_v16  ;;  %v201_v19 = vld [vmem:[#allocation2 + $0x8] sm:$0xff]  ;;  %v207_v28 = vld [vmem:[#allocation2 + $0x38] sm:$0xff] }
 0x10d   :  { %322 = vst.msk [vmem:[#allocation2] sm:$0xff] %vm44_vm0, %v314_v15  ;;  %v315_v21 = vadd.f32 %v286_v13, %v201_v19  ;;  %v205_v32 = vld [vmem:[#allocation2 + $0x28] sm:$0xff] }
 0x10e   :  { %325 = vst.msk [vmem:[#allocation2 + $0x18] sm:$0xff] %vm44_vm0, %v317_v18 }
 0x10f   :  { %323 = vst.msk [vmem:[#allocation2 + $0x8] sm:$0xff] %vm44_vm0, %v315_v21  ;;  %v1558_v23 = vpop.f32.mrb[8].mxu1  ;;  %v1568_v30 = vpop.f32.mrb[8].mxu0 }
 0x110   :  { %v320_v24 = vadd.f32 %v1558_v23, %v206_v22  ;;  %v299_v26 = vpop.f32.mrb[9].mxu1  ;;  %v438_v34 = vpop.f32.mrb[9].mxu0 }
 0x111   :  { %v318_v27 = vadd.f32 %v299_v26, %v204_v25  ;;  %v1559_v29 = vpop.f32.mrb[10].mxu1  ;;  %v1569_v37 = vpop.f32.mrb[10].mxu0 }
 0x112   :  { %328 = vst.msk [vmem:[#allocation2 + $0x30] sm:$0xff] %vm44_vm0, %v320_v24  ;;  %v321_v31 = vadd.f32 %v1559_v29, %v207_v28  ;;  %v302_v33 = vpop.f32.mrb[11].mxu1  ;;  %v441_v40 = vpop.f32.mrb[11].mxu0 }
 0x113   :  { %326 = vst.msk [vmem:[#allocation2 + $0x20] sm:$0xff] %vm44_vm0, %v318_v27  ;;  %v341_v35 = vld [vmem:[#allocation2 + $0x10] sm:$0xff]  ;;  %v319_v36 = vadd.f32 %v302_v33, %v205_v32 }
 0x114   :  { %v455_v38 = vadd.f32 %v1564_v10, %v341_v35  ;;  %329 = vst.msk [vmem:[#allocation2 + $0x38] sm:$0xff] %vm44_vm0, %v321_v31  ;;  %v339_v39 = vld [vmem:[#allocation2] sm:$0xff] }
 0x115   :  { %v453_v41 = vadd.f32 %v422_v14, %v339_v39  ;;  %327 = vst.msk [vmem:[#allocation2 + $0x28] sm:$0xff] %vm44_vm0, %v319_v36  ;;  %v342_v42 = vld [vmem:[#allocation2 + $0x18] sm:$0xff] }
 0x116   :  { %463 = vst.msk [vmem:[#allocation2 + $0x10] sm:$0xff] %vm44_vm0, %v455_v38  ;;  %v456_v43 = vadd.f32 %v1565_v17, %v342_v42  ;;  %v340_v44 = vld [vmem:[#allocation2 + $0x8] sm:$0xff] }
 0x117   :  { %461 = vst.msk [vmem:[#allocation2] sm:$0xff] %vm44_vm0, %v453_v41  ;;  %v454_v45 = vadd.f32 %v425_v20, %v340_v44  ;;  %v1574_v46 = vpop.f32.mrb[12].mxu1  ;;  %v1584_v50 = vpop.f32.mrb[12].mxu0 }
 0x118   :  { %464 = vst.msk [vmem:[#allocation2 + $0x18] sm:$0xff] %vm44_vm0, %v456_v43  ;;  %v561_v47 = vpop.f32.mrb[13].mxu1  ;;  %v700_v54 = vpop.f32.mrb[13].mxu0 }
 0x119   :  { %462 = vst.msk [vmem:[#allocation2 + $0x8] sm:$0xff] %vm44_vm0, %v454_v45  ;;  %v345_v48 = vld [vmem:[#allocation2 + $0x30] sm:$0xff]  ;;  %v1575_v49 = vpop.f32.mrb[14].mxu1  ;;  %v1585_v57 = vpop.f32.mrb[14].mxu0 }
 0x11a   :  { %v459_v51 = vadd.f32 %v1568_v30, %v345_v48  ;;  %v343_v52 = vld [vmem:[#allocation2 + $0x20] sm:$0xff]  ;;  %v564_v53 = vpop.f32.mrb[15].mxu1  ;;  %v703_v60 = vpop.f32.mrb[15].mxu0 }
 0x11b   :  { %v457_v55 = vadd.f32 %v438_v34, %v343_v52  ;;  %v346_v56 = vld [vmem:[#allocation2 + $0x38] sm:$0xff] }
 0x11c   :  { %467 = vst.msk [vmem:[#allocation2 + $0x30] sm:$0xff] %vm44_vm0, %v459_v51  ;;  %v460_v58 = vadd.f32 %v1569_v37, %v346_v56  ;;  %v344_v59 = vld [vmem:[#allocation2 + $0x28] sm:$0xff] }
 0x11d   :  { %465 = vst.msk [vmem:[#allocation2 + $0x20] sm:$0xff] %vm44_vm0, %v457_v55  ;;  %v480_v61 = vld [vmem:[#allocation2 + $0x10] sm:$0xff]  ;;  %v458_v62 = vadd.f32 %v441_v40, %v344_v59 }
 0x11e   :  { %468 = vst.msk [vmem:[#allocation2 + $0x38] sm:$0xff] %vm44_vm0, %v460_v58  ;;  %v594_v63 = vadd.f32 %v1574_v46, %v480_v61  ;;  %v478_v0 = vld [vmem:[#allocation2] sm:$0xff] }
 0x11f   :  { %466 = vst.msk [vmem:[#allocation2 + $0x28] sm:$0xff] %vm44_vm0, %v458_v62  ;;  %v592_v1 = vadd.f32 %v561_v47, %v478_v0  ;;  %v481_v2 = vld [vmem:[#allocation2 + $0x18] sm:$0xff]  ;;  %v1578_v3 = vpop.f32.mrb[16].mxu1  ;;  %v1588_v9 = vpop.f32.mrb[16].mxu0 }
 0x120   :  { %602 = vst.msk [vmem:[#allocation2 + $0x10] sm:$0xff] %vm44_vm0, %v594_v63  ;;  %v595_v4 = vadd.f32 %v1575_v49, %v481_v2  ;;  %v479_v5 = vld [vmem:[#allocation2 + $0x8] sm:$0xff]  ;;  %v577_v6 = vpop.f32.mrb[17].mxu1  ;;  %v716_v11 = vpop.f32.mrb[17].mxu0 }
 0x121   :  { %600 = vst.msk [vmem:[#allocation2] sm:$0xff] %vm44_vm0, %v592_v1  ;;  %v593_v7 = vadd.f32 %v564_v53, %v479_v5  ;;  %v1579_v8 = vpop.f32.mrb[18].mxu1  ;;  %v1589_v13 = vpop.f32.mrb[18].mxu0 }
 0x122   :  { %603 = vst.msk [vmem:[#allocation2 + $0x18] sm:$0xff] %vm44_vm0, %v595_v4  ;;  %v580_v10 = vpop.f32.mrb[19].mxu1  ;;  %v719_v16 = vpop.f32.mrb[19].mxu0 }
 0x123   :  { %601 = vst.msk [vmem:[#allocation2 + $0x8] sm:$0xff] %vm44_vm0, %v593_v7  ;;  %v484_v12 = vld [vmem:[#allocation2 + $0x30] sm:$0xff] }
 0x124   :  { %v598_v14 = vadd.f32 %v1578_v3, %v484_v12  ;;  %v482_v15 = vld [vmem:[#allocation2 + $0x20] sm:$0xff] }
 0x125   :  { %v596_v17 = vadd.f32 %v577_v6, %v482_v15  ;;  %v485_v18 = vld [vmem:[#allocation2 + $0x38] sm:$0xff] }
 0x126   :  { %606 = vst.msk [vmem:[#allocation2 + $0x30] sm:$0xff] %vm44_vm0, %v598_v14  ;;  %v599_v19 = vadd.f32 %v1579_v8, %v485_v18  ;;  %v483_v20 = vld [vmem:[#allocation2 + $0x28] sm:$0xff] }
 0x127   :  { %604 = vst.msk [vmem:[#allocation2 + $0x20] sm:$0xff] %vm44_vm0, %v596_v17  ;;  %v619_v21 = vld [vmem:[#allocation2 + $0x10] sm:$0xff]  ;;  %v597_v22 = vadd.f32 %v580_v10, %v483_v20  ;;  %v1594_v23 = vpop.f32.mrb[20].mxu1  ;;  %v1913_v30 = vpop.f32.mrb[20].mxu0 }
 0x128   :  { %607 = vst.msk [vmem:[#allocation2 + $0x38] sm:$0xff] %vm44_vm0, %v599_v19  ;;  %v733_v24 = vadd.f32 %v1584_v50, %v619_v21  ;;  %v617_v25 = vld [vmem:[#allocation2] sm:$0xff]  ;;  %v839_v26 = vpop.f32.mrb[21].mxu1  ;;  %v978_v34 = vpop.f32.mrb[21].mxu0 }
 0x129   :  { %605 = vst.msk [vmem:[#allocation2 + $0x28] sm:$0xff] %vm44_vm0, %v597_v22  ;;  %v731_v27 = vadd.f32 %v700_v54, %v617_v25  ;;  %v620_v28 = vld [vmem:[#allocation2 + $0x18] sm:$0xff]  ;;  %v1595_v29 = vpop.f32.mrb[22].mxu1  ;;  %v1605_v36 = vpop.f32.mrb[22].mxu0 }
 0x12a   :  { %741 = vst.msk [vmem:[#allocation2 + $0x10] sm:$0xff] %vm44_vm0, %v733_v24  ;;  %v734_v31 = vadd.f32 %v1585_v57, %v620_v28  ;;  %v618_v32 = vld [vmem:[#allocation2 + $0x8] sm:$0xff]  ;;  %v842_v33 = vpop.f32.mrb[23].mxu1  ;;  %v1918_v37 = vpop.f32.mrb[23].mxu0 }
 0x12b   :  { %739 = vst.msk [vmem:[#allocation2] sm:$0xff] %vm44_vm0, %v731_v27  ;;  %v732_v35 = vadd.f32 %v703_v60, %v618_v32 }
 0x12c   :  { %742 = vst.msk [vmem:[#allocation2 + $0x18] sm:$0xff] %vm44_vm0, %v734_v31 }
 0x12d   :  { %740 = vst.msk [vmem:[#allocation2 + $0x8] sm:$0xff] %vm44_vm0, %v732_v35  ;;  %v623_v38 = vld [vmem:[#allocation2 + $0x30] sm:$0xff] }
 0x12e   :  { %v737_v39 = vadd.f32 %v1588_v9, %v623_v38  ;;  %v621_v40 = vld [vmem:[#allocation2 + $0x20] sm:$0xff] }
 0x12f   :  { %v735_v41 = vadd.f32 %v716_v11, %v621_v40  ;;  %v624_v42 = vld [vmem:[#allocation2 + $0x38] sm:$0xff]  ;;  %v1598_v43 = vpop.f32.mrb[24].mxu1  ;;  %v1608_v50 = vpop.f32.mrb[24].mxu0 }
 0x130   :  { %745 = vst.msk [vmem:[#allocation2 + $0x30] sm:$0xff] %vm44_vm0, %v737_v39  ;;  %v738_v44 = vadd.f32 %v1589_v13, %v624_v42  ;;  %v622_v45 = vld [vmem:[#allocation2 + $0x28] sm:$0xff]  ;;  %v855_v46 = vpop.f32.mrb[25].mxu1  ;;  %v994_v54 = vpop.f32.mrb[25].mxu0 }
 0x131   :  { %743 = vst.msk [vmem:[#allocation2 + $0x20] sm:$0xff] %vm44_vm0, %v735_v41  ;;  %v758_v47 = vld [vmem:[#allocation2 + $0x10] sm:$0xff]  ;;  %v736_v48 = vadd.f32 %v719_v16, %v622_v45  ;;  %v1599_v49 = vpop.f32.mrb[26].mxu1  ;;  %v1609_v57 = vpop.f32.mrb[26].mxu0 }
 0x132   :  { %746 = vst.msk [vmem:[#allocation2 + $0x38] sm:$0xff] %vm44_vm0, %v738_v44  ;;  %v872_v51 = vadd.f32 %v1594_v23, %v758_v47  ;;  %v756_v52 = vld [vmem:[#allocation2] sm:$0xff]  ;;  %v858_v53 = vpop.f32.mrb[27].mxu1  ;;  %v997_v60 = vpop.f32.mrb[27].mxu0 }
 0x133   :  { %744 = vst.msk [vmem:[#allocation2 + $0x28] sm:$0xff] %vm44_vm0, %v736_v48  ;;  %v870_v55 = vadd.f32 %v839_v26, %v756_v52  ;;  %v759_v56 = vld [vmem:[#allocation2 + $0x18] sm:$0xff] }
 0x134   :  { %880 = vst.msk [vmem:[#allocation2 + $0x10] sm:$0xff] %vm44_vm0, %v872_v51  ;;  %v873_v58 = vadd.f32 %v1595_v29, %v759_v56  ;;  %v757_v59 = vld [vmem:[#allocation2 + $0x8] sm:$0xff] }
 0x135   :  { %878 = vst.msk [vmem:[#allocation2] sm:$0xff] %vm44_vm0, %v870_v55  ;;  %v871_v61 = vadd.f32 %v842_v33, %v757_v59 }
 0x136   :  { %881 = vst.msk [vmem:[#allocation2 + $0x18] sm:$0xff] %vm44_vm0, %v873_v58 }
 0x137   :  { %879 = vst.msk [vmem:[#allocation2 + $0x8] sm:$0xff] %vm44_vm0, %v871_v61  ;;  %v762_v62 = vld [vmem:[#allocation2 + $0x30] sm:$0xff]  ;;  %v1614_v63 = vpop.f32.mrb[28].mxu1  ;;  %v1929_v6 = vpop.f32.mrb[28].mxu0 }
 0x138   :  { %v876_v0 = vadd.f32 %v1598_v43, %v762_v62  ;;  %v760_v1 = vld [vmem:[#allocation2 + $0x20] sm:$0xff]  ;;  %v1117_v2 = vpop.f32.mrb[29].mxu1  ;;  %v1932_v10 = vpop.f32.mrb[29].mxu0 }
 0x139   :  { %v874_v3 = vadd.f32 %v855_v46, %v760_v1  ;;  %v763_v4 = vld [vmem:[#allocation2 + $0x38] sm:$0xff]  ;;  %v1615_v5 = vpop.f32.mrb[30].mxu1  ;;  %v1935_v13 = vpop.f32.mrb[30].mxu0 }
 0x13a   :  { %884 = vst.msk [vmem:[#allocation2 + $0x30] sm:$0xff] %vm44_vm0, %v876_v0  ;;  %v877_v7 = vadd.f32 %v1599_v49, %v763_v4  ;;  %v761_v8 = vld [vmem:[#allocation2 + $0x28] sm:$0xff]  ;;  %v1120_v9 = vpop.f32.mrb[31].mxu1  ;;  %v1939_v16 = vpop.f32.mrb[31].mxu0 }
 0x13b   :  { %882 = vst.msk [vmem:[#allocation2 + $0x20] sm:$0xff] %vm44_vm0, %v874_v3  ;;  %v897_v11 = vld [vmem:[#allocation2 + $0x10] sm:$0xff]  ;;  %v875_v12 = vadd.f32 %v858_v53, %v761_v8 }
 0x13c   :  { %885 = vst.msk [vmem:[#allocation2 + $0x38] sm:$0xff] %vm44_vm0, %v877_v7  ;;  %v1011_v14 = vadd.f32 %v1913_v30, %v897_v11  ;;  %v895_v15 = vld [vmem:[#allocation2] sm:$0xff] }
 0x13d   :  { %883 = vst.msk [vmem:[#allocation2 + $0x28] sm:$0xff] %vm44_vm0, %v875_v12  ;;  %v1009_v17 = vadd.f32 %v978_v34, %v895_v15  ;;  %v898_v18 = vld [vmem:[#allocation2 + $0x18] sm:$0xff] }
 0x13e   :  { %1019 = vst.msk [vmem:[#allocation2 + $0x10] sm:$0xff] %vm44_vm0, %v1011_v14  ;;  %v1012_v19 = vadd.f32 %v1605_v36, %v898_v18  ;;  %v896_v20 = vld [vmem:[#allocation2 + $0x8] sm:$0xff] }
 0x13f   :  { %1017 = vst.msk [vmem:[#allocation2] sm:$0xff] %vm44_vm0, %v1009_v17  ;;  %v1010_v21 = vadd.f32 %v1918_v37, %v896_v20  ;;  %v1618_v22 = vpop.f32.mrb[32].mxu1  ;;  %v1628_v26 = vpop.f32.mrb[32].mxu0 }
 0x140   :  { %1020 = vst.msk [vmem:[#allocation2 + $0x18] sm:$0xff] %vm44_vm0, %v1012_v19  ;;  %v1133_v23 = vpop.f32.mrb[33].mxu1  ;;  %v1272_v30 = vpop.f32.mrb[33].mxu0 }
 0x141   :  { %1018 = vst.msk [vmem:[#allocation2 + $0x8] sm:$0xff] %vm44_vm0, %v1010_v21  ;;  %v901_v24 = vld [vmem:[#allocation2 + $0x30] sm:$0xff]  ;;  %v1619_v25 = vpop.f32.mrb[34].mxu1  ;;  %v1629_v33 = vpop.f32.mrb[34].mxu0 }
 0x142   :  { %v1015_v27 = vadd.f32 %v1608_v50, %v901_v24  ;;  %v899_v28 = vld [vmem:[#allocation2 + $0x20] sm:$0xff]  ;;  %v1136_v29 = vpop.f32.mrb[35].mxu1  ;;  %v1275_v36 = vpop.f32.mrb[35].mxu0 }
 0x143   :  { %v1013_v31 = vadd.f32 %v994_v54, %v899_v28  ;;  %v902_v32 = vld [vmem:[#allocation2 + $0x38] sm:$0xff] }
 0x144   :  { %1023 = vst.msk [vmem:[#allocation2 + $0x30] sm:$0xff] %vm44_vm0, %v1015_v27  ;;  %v1016_v34 = vadd.f32 %v1609_v57, %v902_v32  ;;  %v900_v35 = vld [vmem:[#allocation2 + $0x28] sm:$0xff] }
 0x145   :  { %1021 = vst.msk [vmem:[#allocation2 + $0x20] sm:$0xff] %vm44_vm0, %v1013_v31  ;;  %v1036_v37 = vld [vmem:[#allocation2 + $0x10] sm:$0xff]  ;;  %v1014_v38 = vadd.f32 %v997_v60, %v900_v35 }
 0x146   :  { %1024 = vst.msk [vmem:[#allocation2 + $0x38] sm:$0xff] %vm44_vm0, %v1016_v34  ;;  %v1150_v39 = vadd.f32 %v1614_v63, %v1036_v37  ;;  %v1034_v40 = vld [vmem:[#allocation2] sm:$0xff] }
 0x147   :  { %1022 = vst.msk [vmem:[#allocation2 + $0x28] sm:$0xff] %vm44_vm0, %v1014_v38  ;;  %v1148_v41 = vadd.f32 %v1117_v2, %v1034_v40  ;;  %v1037_v42 = vld [vmem:[#allocation2 + $0x18] sm:$0xff] }
 0x148   :  { %1158 = vst.msk [vmem:[#allocation2 + $0x10] sm:$0xff] %vm44_vm0, %v1150_v39  ;;  %v1151_v43 = vadd.f32 %v1615_v5, %v1037_v42  ;;  %v1035_v44 = vld [vmem:[#allocation2 + $0x8] sm:$0xff] }
 0x149   :  { %1156 = vst.msk [vmem:[#allocation2] sm:$0xff] %vm44_vm0, %v1148_v41  ;;  %v1149_v45 = vadd.f32 %v1120_v9, %v1035_v44 }
 0x14a   :  { %1159 = vst.msk [vmem:[#allocation2 + $0x18] sm:$0xff] %vm44_vm0, %v1151_v43 }
 0x14b   :  { %1157 = vst.msk [vmem:[#allocation2 + $0x8] sm:$0xff] %vm44_vm0, %v1149_v45  ;;  %v1040_v46 = vld [vmem:[#allocation2 + $0x30] sm:$0xff] }
 0x14c   :  { %v1154_v47 = vadd.f32 %v1618_v22, %v1040_v46  ;;  %v1038_v48 = vld [vmem:[#allocation2 + $0x20] sm:$0xff] }
 0x14d   :  { %v1152_v49 = vadd.f32 %v1133_v23, %v1038_v48  ;;  %v1041_v50 = vld [vmem:[#allocation2 + $0x38] sm:$0xff] }
 0x14e   :  { %1162 = vst.msk [vmem:[#allocation2 + $0x30] sm:$0xff] %vm44_vm0, %v1154_v47  ;;  %v1155_v51 = vadd.f32 %v1619_v25, %v1041_v50  ;;  %v1039_v52 = vld [vmem:[#allocation2 + $0x28] sm:$0xff] }
 0x14f   :  { %1160 = vst.msk [vmem:[#allocation2 + $0x20] sm:$0xff] %vm44_vm0, %v1152_v49  ;;  %v1175_v53 = vld [vmem:[#allocation2 + $0x10] sm:$0xff]  ;;  %v1153_v54 = vadd.f32 %v1136_v29, %v1039_v52 }
 0x150   :  { %1163 = vst.msk [vmem:[#allocation2 + $0x38] sm:$0xff] %vm44_vm0, %v1155_v51  ;;  %v1289_v55 = vadd.f32 %v1929_v6, %v1175_v53  ;;  %v1173_v56 = vld [vmem:[#allocation2] sm:$0xff] }
 0x151   :  { %1161 = vst.msk [vmem:[#allocation2 + $0x28] sm:$0xff] %vm44_vm0, %v1153_v54  ;;  %v1287_v57 = vadd.f32 %v1932_v10, %v1173_v56  ;;  %v1176_v58 = vld [vmem:[#allocation2 + $0x18] sm:$0xff] }
 0x152   :  { %1297 = vst.msk [vmem:[#allocation2 + $0x10] sm:$0xff] %vm44_vm0, %v1289_v55  ;;  %v1290_v59 = vadd.f32 %v1935_v13, %v1176_v58  ;;  %v1174_v60 = vld [vmem:[#allocation2 + $0x8] sm:$0xff] }
 0x153   :  { %1295 = vst.msk [vmem:[#allocation2] sm:$0xff] %vm44_vm0, %v1287_v57  ;;  %v1288_v61 = vadd.f32 %v1939_v16, %v1174_v60 }
 0x154   :  { %1298 = vst.msk [vmem:[#allocation2 + $0x18] sm:$0xff] %vm44_vm0, %v1290_v59 }
 0x155   :  { %1296 = vst.msk [vmem:[#allocation2 + $0x8] sm:$0xff] %vm44_vm0, %v1288_v61  ;;  %v1179_v62 = vld [vmem:[#allocation2 + $0x30] sm:$0xff] }
 0x156   :  { %v1293_v63 = vadd.f32 %v1628_v26, %v1179_v62  ;;  %v1177_v0 = vld [vmem:[#allocation2 + $0x20] sm:$0xff] }
 0x157   :  { %v1291_v1 = vadd.f32 %v1272_v30, %v1177_v0  ;;  %v1180_v2 = vld [vmem:[#allocation2 + $0x38] sm:$0xff] }
 0x158   :  { %1301 = vst.msk [vmem:[#allocation2 + $0x30] sm:$0xff] %vm44_vm0, %v1293_v63  ;;  %v1294_v3 = vadd.f32 %v1629_v33, %v1180_v2  ;;  %v1178_v4 = vld [vmem:[#allocation2 + $0x28] sm:$0xff] }
 0x159   :  { %1299 = vst.msk [vmem:[#allocation2 + $0x20] sm:$0xff] %vm44_vm0, %v1291_v1  ;;  %v1292_v5 = vadd.f32 %v1275_v36, %v1178_v4  ;;  %v1305_v6 = vld [vmem:[#allocation2 + $0x10] sm:$0xff] }
 0x15a   :  { %1302 = vst.msk [vmem:[#allocation2 + $0x38] sm:$0xff] %vm44_vm0, %v1294_v3  ;;  %v1303_v7 = vld [vmem:[#allocation2] sm:$0xff]  ;;  %v1313_v8 = vpack.c.bf16 %v1305_v6, %v1305_v6  ;;  %v1351_v19 = vmul.f32 %v1305_v6, %v1305_v6  ;;  %v1331_v21 = vsel %vm44_vm0, %v1305_v6, 0.0 }
 0x15b   :  { %1300 = vst.msk [vmem:[#allocation2 + $0x28] sm:$0xff] %vm44_vm0, %v1292_v5  ;;  %v1306_v9 = vld [vmem:[#allocation2 + $0x18] sm:$0xff]  ;;  %v1311_v10 = vpack.c.bf16 %v1303_v7, %v1303_v7  ;;  %v1349_v13 = vmul.f32 %v1303_v7, %v1303_v7  ;;  %v1328_v15 = vsel %vm44_vm0, %v1303_v7, 0.0 }
 0x15c   :  { %v1304_v11 = vld [vmem:[#allocation2 + $0x8] sm:$0xff]  ;;  %v1314_v12 = vpack.c.bf16 %v1306_v9, %v1306_v9  ;;  %1322 = vst.msk [vmem:[#allocation8 + $0x8] sm:$0xf] %vm1319_vm2, %v1313_v8  ;;  %v1352_v26 = vmul.f32 %v1306_v9, %v1306_v9  ;;  %v1333_v30 = vsel %vm44_vm0, %v1306_v9, 0.0  ;;  %v1360_v36 = vsel %vm44_vm0, %v1351_v19, 0.0 }
 0x15d   :  { %v1312_v14 = vpack.c.bf16 %v1304_v11, %v1304_v11  ;;  %1320 = vst.msk [vmem:[#allocation8] sm:$0xf] %vm1319_vm2, %v1311_v10  ;;  %v1329_v16 = vsel %vm44_vm0, %v1304_v11, 0.0  ;;  %v1350_v17 = vmul.f32 %v1304_v11, %v1304_v11  ;;  %v1357_v27 = vsel %vm44_vm0, %v1349_v13, 0.0 }
 0x15e   :  { %1323 = vst.msk [vmem:[#allocation8 + $0xc] sm:$0xf] %vm1319_vm2, %v1314_v12  ;;  %v1330_v18 = vadd.f32 %v1329_v16, %v1328_v15  ;;  %v1362_v42 = vsel %vm44_vm0, %v1352_v26, 0.0 }
 0x15f   :  { %v1309_v20 = vld [vmem:[#allocation2 + $0x30] sm:$0xff]  ;;  %1321 = vst.msk [vmem:[#allocation8 + $0x4] sm:$0xf] %vm1319_vm2, %v1312_v14  ;;  %v1358_v22 = vsel %vm44_vm0, %v1350_v17, 0.0 }
 0x160   :  { %v1307_v23 = vld [vmem:[#allocation2 + $0x20] sm:$0xff]  ;;  %v1317_v24 = vpack.c.bf16 %v1309_v20, %v1309_v20  ;;  %v1332_v25 = vadd.f32 %v1331_v21, %v1330_v18  ;;  %v1359_v31 = vadd.f32 %v1358_v22, %v1357_v27 }
 0x161   :  { %v1310_v28 = vld [vmem:[#allocation2 + $0x38] sm:$0xff]  ;;  %v1315_v29 = vpack.c.bf16 %v1307_v23, %v1307_v23  ;;  %v1353_v35 = vmul.f32 %v1307_v23, %v1307_v23  ;;  %v1335_v38 = vsel %vm44_vm0, %v1307_v23, 0.0 }
 0x162   :  { %v1308_v32 = vld [vmem:[#allocation2 + $0x28] sm:$0xff]  ;;  %v1318_v33 = vpack.c.bf16 %v1310_v28, %v1310_v28  ;;  %1326 = vst.msk [vmem:[#allocation8 + $0x18] sm:$0xf] %vm1319_vm2, %v1317_v24  ;;  %v1334_v34 = vadd.f32 %v1333_v30, %v1332_v25  ;;  %v1361_v39 = vadd.f32 %v1360_v36, %v1359_v31 }
 0x163   :  { %v1316_v37 = vpack.c.bf16 %v1308_v32, %v1308_v32  ;;  %1324 = vst.msk [vmem:[#allocation8 + $0x10] sm:$0xf] %vm1319_vm2, %v1315_v29  ;;  %v1354_v41 = vmul.f32 %v1308_v32, %v1308_v32  ;;  %v1337_v43 = vsel %vm44_vm0, %v1308_v32, 0.0 }
 0x164   :  { %1327 = vst.msk [vmem:[#allocation8 + $0x1c] sm:$0xf] %vm1319_vm2, %v1318_v33  ;;  %v1336_v40 = vadd.f32 %v1335_v38, %v1334_v34  ;;  %v1363_v44 = vadd.f32 %v1362_v42, %v1361_v39 }
 0x165   :  { %1325 = vst.msk [vmem:[#allocation8 + $0x14] sm:$0xf] %vm1319_vm2, %v1316_v37 }
 0x166   :  { %1739 = shalt.err (!%p1736_p6)
}
 0x167   :  { %s1740_s14 = scalar_lea.hbm %s2024_s2, 512 }
 0x168   :  { %p1741_p7 = scmp.ne.s32.totalorder %s2024_s2, %s1740_s14  ;;  %p1744_p8 = scmp.lt.u32.totalorder %s1740_s14, %s2024_s2 }
 0x16a   :  { %p1746_p9 = pnand %p1744_p8, %p1741_p7 }
 0x16c   :  { %1749 = shalt.err (!%p1746_p9)
}
 0x16d   :  { %1393 = dma.vmem_to_hbm [thread:$0]  %s1388_s10, 512, %s2024_s2, [#allocation5], %s1781_s22, %s1781_s22, %s1782_s23   ;;  %v1338_v45 = vadd.f32 %v1337_v43, %v1336_v40  ;;  %v1355_v46 = vmul.f32 %v1309_v20, %v1309_v20  ;;  %v1364_v47 = vsel %vm44_vm0, %v1353_v35, 0.0  ;;  %v1339_v48 = vsel %vm44_vm0, %v1309_v20, 0.0 }
 0x16e   :  { %v1365_v49 = vadd.f32 %v1364_v47, %v1363_v44  ;;  %v1356_v51 = vmul.f32 %v1310_v28, %v1310_v28  ;;  %v1366_v52 = vsel %vm44_vm0, %v1354_v41, 0.0  ;;  %v1341_v53 = vsel %vm44_vm0, %v1310_v28, 0.0  ;;  %s1786_s2 = smov [#allocation9]  }
 0x16f   :  { %v1340_v50 = vadd.f32 %v1339_v48, %v1338_v45  ;;  %v1368_v56 = vsel %vm44_vm0, %v1355_v46, 0.0  ;;  %s1400_s21 = sshll.u32 %s1786_s2, 4  ;;  %vm1378_vm3 = vcmask 1040384   ;;  %vm1380_vm4 = vcmask 517120   ;;  %s1401_s21 = int_to_ptr.vmem [resolvable:$true] %s1400_s21 }
 0x170   :  { %v1367_v54 = vadd.f32 %v1366_v52, %v1365_v49  ;;  %v1370_v59 = vsel %vm44_vm0, %v1356_v51, 0.0  ;;  %s1750_s22 = scalar_lea.vmem %s1401_s21, 32  ;;  %p1755_p11 = scmp.lt.s32.totalorder %s1401_s21, %s1401_s21 }
 0x171   :  { %v1342_v55 = vadd.f32 %v1341_v53, %v1340_v50  ;;  %p1751_p10 = scmp.ne.s32.totalorder %s1401_s21, %s1750_s22  ;;  %p1756_p12 = scmp.lt.s32.totalorder %s1750_s22, %s1750_s22 }
 0x172   :  { %v1369_v57 = vadd.f32 %v1368_v56, %v1367_v54 }
 0x173   :  { %v1343_v58 = vrot.slane %v1342_v55, 4  ;;  %p1757_p13 = por %p1756_p12, %p1755_p11 }
 0x174   :  { %v1371_v60 = vadd.f32 %v1370_v59, %v1369_v57 }
 0x175   :  { %v1344_v61 = vadd.f32 %v1343_v58, %v1342_v55  ;;  %p1758_p0 = pnand %p1757_p13, %p1751_p10 }
 0x176   :  { %v1372_v62 = vrot.slane %v1371_v60, 4 }
 0x177   :  { %v1345_v63 = vrot.slane %v1344_v61, 2 }
 0x178   :  { %v1373_v0 = vadd.f32 %v1372_v62, %v1371_v60 }
 0x179   :  { %v1346_v1 = vadd.f32 %v1345_v63, %v1344_v61 }
 0x17a   :  { %v1374_v2 = vrot.slane %v1373_v0, 2 }
 0x17b   :  { %v1347_v3 = vrot.slane %v1346_v1, 1 }
 0x17c   :  { %v1375_v4 = vadd.f32 %v1374_v2, %v1373_v0 }
 0x17d   :  { %v1348_v6 = vadd.f32 %v1347_v3, %v1346_v1 }
 0x17e   :  { %v1376_v5 = vrot.slane %v1375_v4, 1 }
 0x180   :  { %v1377_v7 = vadd.f32 %v1376_v5, %v1375_v4 }
 0x182   :  { %v1379_v8 = vsel %vm1378_vm3, %v1348_v6, %v1377_v7 }
 0x183   :  { %1381 = vst.msk [vmem:[#allocation9] sm:$0x3] %vm1380_vm4, %v1379_v8 }
 0x184   :  { %1761 = shalt.err (!%p1758_p0)
}
 0x185   :  { %s1762_s25 = scalar_lea.hbm %s2025_s3, 32 }
 0x186   :  { %p1763_p1 = scmp.ne.s32.totalorder %s2025_s3, %s1762_s25  ;;  %p1766_p2 = scmp.lt.u32.totalorder %s1762_s25, %s2025_s3 }
 0x188   :  { %p1768_p3 = pnand %p1766_p2, %p1763_p1 }
 0x18a   :  { %1771 = shalt.err (!%p1768_p3)
}
 0x18b   :  { %1403 = dma.vmem_to_hbm [thread:$0]  %s1401_s21, 32, %s2025_s3, [#allocation10]  }
 0x18c   :  { %1776 = dma.done.wait [#allocation5], 512  }
 0x18d   :  { %1777 = vsyncadd [#allocation5], 4294966784 }
 0x18e   :  { %1778 = dma.done.wait [#allocation10], 32  }
 0x18f   :  { %1779 = vsyncadd [#allocation10], 4294967264 }
 0x190   :  { %1410 = vsyncpa [#allocation4], 1 }
 0x191   :  { %1411 = vsyncpa [#allocation7], 1 }
 0x192   :  { %1412 = vsyncpa [#allocation5], 1 }
 0x193   :  { %1413 = vsyncpa [#allocation10], 1 }

// kernel: tpu_custom_call.1
= control target key start
LH: loop header
LB: loop body
LE: loop exit
PB: predicated region body
PF: predicated region fallthrough
CT: control target
= control target key end

     0   :  { %v234_v1 = vmov 0.0   ;;  %vm235_vm0 = vmmov 0   ;;  %vm20_vm1 = vcmask 523264   ;;  %s301_s0 = inlined_call_operand.vmem [shape: bf16[8,128], index: 0, kind: input, shape index: {}]   ;;  %s302_s1 = inlined_call_operand.vmem [shape: bf16[128,64], index: 1, kind: input, shape index: {}]   ;;  %s303_s2 = inlined_call_operand.vmem [shape: f32[1,64], index: 2, kind: input, shape index: {}]   ;;  %s304_s3 = inlined_call_operand.hbm [shape: bf16[8,64], index: 3, kind: output, shape index: {}]  }
   0x1   :  { %v202_v0 = vld [vmem:[%s302_s1] sm:$0xff]   ;;  %179 = vmatprep.subr.bf16.mxu0 %v234_v1  ;;  %v203_v2 = vld [vmem:[%s302_s1 + $0x8] sm:$0xff]   ;;  %195 = vmatprep.mubr.msk.bf16.mxu0 %vm235_vm0, %v234_v1  ;;  %21 = vst.msk [vmem:[#allocation2] sm:$0xff] %vm20_vm1, %v234_v1  ;;  %v204_v3 = vld [vmem:[%s302_s1 + $0x10] sm:$0xff]  }
   0x2   :  { %180 = vmatpush3.bf16.msra.mxu0 %v202_v0 }
   0x3   :  { %181 = vmatprep.subr.bf16.mxu0 %v234_v1 }
   0x6   :  { %182 = vmatpush3.bf16.msra.mxu0 %v203_v2 }
   0x7   :  { %183 = vmatprep.subr.bf16.mxu0 %v234_v1 }
   0x8   :  { %8 = vsyncpa [#allocation4], 0  ;;  %v205_v4 = vld [vmem:[%s302_s1 + $0x18] sm:$0xff]   ;;  %v206_v5 = vld [vmem:[%s302_s1 + $0x20] sm:$0xff]   ;;  %vm145_vm2 = vcmask 519168  }
   0x9   :  { %v207_v6 = vld [vmem:[%s302_s1 + $0x28] sm:$0xff]   ;;  %v208_v7 = vld [vmem:[%s302_s1 + $0x30] sm:$0xff]   ;;  %v209_v8 = vld [vmem:[%s302_s1 + $0x38] sm:$0xff]   ;;  %s236_s1 = smov [#allocation3]  }
   0xa   :  { %184 = vmatpush3.bf16.msra.mxu0 %v204_v3  ;;  %v23_v9 = vld [vmem:[%s301_s0] sm:$0xf]  ;;  %s153_s5 = sshll.u32 %s236_s1, 4  ;;  %s154_s5 = int_to_ptr.vmem [resolvable:$true] %s153_s5 }
   0xb   :  { %185 = vmatprep.subr.bf16.mxu0 %v234_v1  ;;  %v22_v10 = vld [vmem:[#allocation2] sm:$0xff]  ;;  %s210_s0 = scalar_lea.vmem %s154_s5, 64  ;;  %p215_p1 = scmp.lt.s32.totalorder %s154_s5, %s154_s5 }
   0xc   :  { %v169_v16 = vld [vmem:[%s303_s2] ss:$0 sm:$0xff]  ;;  %p211_p0 = scmp.ne.s32.totalorder %s154_s5, %s210_s0  ;;  %p216_p2 = scmp.lt.s32.totalorder %s210_s0, %s210_s0 }
   0xe   :  { %186 = vmatpush3.bf16.msra.mxu0 %v205_v4  ;;  %p217_p3 = por %p216_p2, %p215_p1 }
   0xf   :  { %187 = vmatprep.subr.bf16.mxu0 %v234_v1 }
  0x10   :  { %p218_p4 = pnand %p217_p3, %p211_p0 }
  0x12   :  { %188 = vmatpush3.bf16.msra.mxu0 %v206_v5 }
  0x13   :  { %189 = vmatprep.subr.bf16.mxu0 %v234_v1 }
  0x16   :  { %190 = vmatpush3.bf16.msra.mxu0 %v207_v6 }
  0x17   :  { %191 = vmatprep.subr.bf16.mxu0 %v234_v1 }
  0x1a   :  { %192 = vmatpush3.bf16.msra.mxu0 %v208_v7 }
  0x1b   :  { %193 = vmatprep.subr.bf16.mxu0 %v234_v1 }
  0x1e   :  { %194 = vmatpush3.bf16.msra.mxu0 %v209_v8 }
  0x21   :  { %196 = vmatmul.mubr.bf16.vlgmr.msra.gmra.mrb[0].mxu0 %v23_v9 }
  0xf4   :  { %v122_v11 = vpop.f32.mrb[0].mxu0 }
  0xf5   :  { %v128_v12 = vadd.f32 %v122_v11, %v22_v10  ;;  %v197_v13 = vpop.f32.mrb[1].mxu0 }
  0xf6   :  { %v125_v14 = vpop.f32.mrb[2].mxu0 }
  0xf7   :  { %130 = vst.msk [vmem:[#allocation2] sm:$0xff] %vm20_vm1, %v128_v12  ;;  %v198_v15 = vpop.f32.mrb[3].mxu0 }
  0xfe   :  { %v134_v17 = vld [vmem:[#allocation2] sm:$0xff] }
  0xff   :  { %v142_v18 = vadd.f32 %v169_v16, %v134_v17 }
 0x101   :  { %v143_v19 = vmax.f32 %v142_v18, 0.0 }
 0x103   :  { %v144_v20 = vpack.c.bf16 %v143_v19, %v143_v19 }
 0x105   :  { %146 = vst.msk [vmem:[#allocation3] sm:$0xf] %vm145_vm2, %v144_v20 }
 0x106   :  { %221 = shalt.err (!%p218_p4)
}
 0x107   :  { %s222_s2 = scalar_lea.hbm %s304_s3, 64 }
 0x108   :  { %p223_p5 = scmp.ne.s32.totalorder %s304_s3, %s222_s2  ;;  %p226_p6 = scmp.lt.u32.totalorder %s222_s2, %s304_s3 }
 0x10a   :  { %p228_p7 = pnand %p226_p6, %p223_p5 }
 0x10c   :  { %231 = shalt.err (!%p228_p7)
}
 0x10d   :  { %156 = dma.vmem_to_hbm [thread:$0]  %s154_s5, 64, %s304_s3, [#allocation4]  }
 0x10e   :  { %232 = dma.done.wait [#allocation4], 64  }
 0x10f   :  { %233 = vsyncadd [#allocation4], 4294967232 }
 0x110   :  { %160 = vsyncpa [#allocation4], 1 }

</bundles_post_ra>
